<compile_context>
chip_gen: v7x
topology: tpu7x:2x2x1
jax: 0.10.0
libtpu: 0.0.40
codegen_flags: <defaults>
</compile_context>

<pallas_src>
import math

import jax
import jax.numpy as jnp
from jax.experimental import pallas as pl
from jax.experimental.pallas import tpu as pltpu

# ---------------- configuration (small, consistent with the module) ----------
INPUT_SIZE = 4          # number of series == number of output heads
HIDDEN_SIZE = 32        # LSTM hidden size == embedding size
NUM_LAYERS = 2
BATCH = 2
SEQ = 8
NB = INPUT_SIZE * BATCH  # fused head*batch rows processed by the shared encoder
H = HIDDEN_SIZE
GH = 4 * H               # packed gate width [i|f|g|o] = 128 lanes

# ----------------------- packed-parameter slab layout ------------------------
# Slab P128: (392, 128) f32
ROW_WFOLD = 0            # 4 heads x 8 rows (In=4 real rows + 4 zero-pad rows)
ROW_BFOLD = 32           # folded layer-0 bias (b_emb @ w_ih0 + b_lstm0)
ROW_B1 = 33              # layer-1 bias (b_ih + b_hh folded)
ROW_BD2 = 34             # decoder stage-2 bias, heads concatenated
ROW_BD3 = 35             # decoder stage-3 bias in lanes 0:4
ROW_WD3 = 36             # decoder stage-3 weights, heads concatenated
ROW_WHH0 = 40            # layer-0 recurrent weights (32, 128)
ROW_WIH1 = 72            # layer-1 input weights    (32, 128)
ROW_WHH1 = 104           # layer-1 recurrent weights(32, 128)
ROW_WD2 = 136            # block-diag decoder stage-2 weights (256, 128)
P128_ROWS = 392
# Slab P256: (136, 256) f32
ROW_WD1 = 0              # block-diag decoder stage-1 weights (128, 256)
ROW_BD1 = 128            # decoder stage-1 bias, heads concatenated
P256_ROWS = 136


def _sigmoid(v):
    # reference-side sigmoid (kernel uses the tanh reformulation)
    return 1.0 / (1.0 + jnp.exp(-v))


# --------------------------- Pallas kernel -----------------------------------
def share_lstm_kernel(x_ref, p128_ref, p256_ref, out_ref):
    # ---- folded layer-0 input projection for all heads / timesteps ----------
    x = x_ref[...]                                        # (B, S, In)
    xf = x.reshape(BATCH * SEQ, INPUT_SIZE)
    xf = jnp.concatenate(
        [xf, jnp.zeros((BATCH * SEQ, 8 - INPUT_SIZE), jnp.float32)], axis=1)

    b_fold = p128_ref[ROW_BFOLD:ROW_BFOLD + 1, :]         # (1, GH)
    gx_parts = []
    for n in range(INPUT_SIZE):
        wfn = p128_ref[ROW_WFOLD + 8 * n: ROW_WFOLD + 8 * (n + 1), :]   # (8, GH)
        gx_parts.append(jnp.dot(xf, wfn, preferred_element_type=jnp.float32))
    # rows ordered (head, batch, step); reorder step-major so the per-step slice
    # inside the recurrence is a single contiguous (NB, GH) vreg block.
    gx0 = jnp.concatenate(gx_parts, axis=0) + b_fold      # (NB*S, GH)
    gx0 = gx0.reshape(NB, SEQ, GH).transpose(1, 0, 2)     # (S, NB, GH)

    # ---- gate nonlinearity on the full packed [i|f|g|o] vreg -----------------
    lane = jax.lax.broadcasted_iota(jnp.int32, (NB, GH), 1)
    is_g = jnp.logical_and(lane >= 2 * H, lane < 3 * H)
    pre = jnp.where(is_g, 1.0, 0.5).astype(jnp.float32)   # tanh for g, sigmoid else
    off = jnp.where(is_g, 0.0, 0.5).astype(jnp.float32)

    def gate_act(g):
        t = jnp.tanh(g * pre)                             # one EUP push per vreg
        return t * pre + off                              # sigmoid = 0.5*tanh(0.5x)+0.5

    whh0 = p128_ref[ROW_WHH0:ROW_WHH0 + H, :]             # (32, 128)
    wih1 = p128_ref[ROW_WIH1:ROW_WIH1 + H, :]             # (32, 128)
    whh1 = p128_ref[ROW_WHH1:ROW_WHH1 + H, :]             # (32, 128)
    b1 = p128_ref[ROW_B1:ROW_B1 + 1, :]                   # (1, 128)

    h0 = jnp.zeros((NB, H), jnp.float32)
    c0 = jnp.zeros((NB, H), jnp.float32)
    h1 = jnp.zeros((NB, H), jnp.float32)
    c1 = jnp.zeros((NB, H), jnp.float32)

    # interleaved 2-layer recurrence: layer 1 consumes layer 0's h_t in-step
    for t in range(SEQ):
        g = gx0[t] + jnp.dot(h0, whh0, preferred_element_type=jnp.float32)
        a = gate_act(g)
        c0 = a[:, H:2 * H] * c0 + a[:, 0:H] * a[:, 2 * H:3 * H]
        h0 = a[:, 3 * H:4 * H] * jnp.tanh(c0)

        g = (jnp.dot(h0, wih1, preferred_element_type=jnp.float32)
             + jnp.dot(h1, whh1, preferred_element_type=jnp.float32) + b1)
        a = gate_act(g)
        c1 = a[:, H:2 * H] * c1 + a[:, 0:H] * a[:, 2 * H:3 * H]
        h1 = a[:, 3 * H:4 * H] * jnp.tanh(c1)

    # ---- heads side by side along lanes for the block-diag decoder ----------
    hcat = (h1.reshape(INPUT_SIZE, BATCH, H)
              .transpose(1, 0, 2)
              .reshape(BATCH, INPUT_SIZE * H))            # (B, 128)

    wd1_bd = p256_ref[ROW_WD1:ROW_WD1 + INPUT_SIZE * H, :]            # (128, 256)
    bd1 = p256_ref[ROW_BD1:ROW_BD1 + 1, :]                            # (1, 256)
    d1 = jnp.maximum(
        jnp.dot(hcat, wd1_bd, preferred_element_type=jnp.float32) + bd1, 0.0)

    wd2_bd = p128_ref[ROW_WD2:ROW_WD2 + 2 * INPUT_SIZE * H, :]        # (256, 128)
    bd2 = p128_ref[ROW_BD2:ROW_BD2 + 1, :]                            # (1, 128)
    d2 = jnp.maximum(
        jnp.dot(d1, wd2_bd, preferred_element_type=jnp.float32) + bd2, 0.0)

    # final H -> 1 per-head projection on VPU multiply + per-group lane reduce
    wd3 = p128_ref[ROW_WD3:ROW_WD3 + 1, :]                            # (1, 128)
    bd3 = p128_ref[ROW_BD3:ROW_BD3 + 1, 0:INPUT_SIZE]                 # (1, 4)
    d3 = (d2 * wd3).reshape(BATCH, INPUT_SIZE, H).sum(axis=-1) + bd3  # (B, N)

    out_ref[...] = d3                                     # (B, N) — no wrapper transpose


# --------------------------- wrapper ------------------------------------------
def share_lstm_forward(x, p128, p256):
    """x: (batch, seq, input_size) f32, packed slabs -> (batch, input_size)."""
    vmem = pl.BlockSpec(memory_space=pltpu.MemorySpace.VMEM)
    return pl.pallas_call(
        share_lstm_kernel,
        out_shape=jax.ShapeDtypeStruct((BATCH, INPUT_SIZE), jnp.float32),
        in_specs=[vmem, vmem, vmem],
        out_specs=vmem,
    )(x, p128, p256)


# --------------------------- host-side parameter packing ----------------------
def pack_params(p):
    """Fold/block-diagonalize the 13 parameter arrays into 2 f32 slabs (one-time)."""
    N, Hs = INPUT_SIZE, HIDDEN_SIZE
    wih0, whh0, b0 = p["w_ih"][0], p["w_hh"][0], p["b_lstm"][0]
    wih1, whh1, b1 = p["w_ih"][1], p["w_hh"][1], p["b_lstm"][1]

    # fold mask * embedding * layer-0 input weights (per head), K padded 4 -> 8
    w_me = p["mask"][:, :, None] * p["w_emb"][None, :, :]            # (N, In, H)
    w_fold = jnp.einsum("nih,hg->nig", w_me, wih0)                   # (N, In, GH)
    w_fold_pad = jnp.zeros((N, 8, GH), jnp.float32).at[:, :N, :].set(w_fold)
    b_fold = p["b_emb"][0] @ wih0 + b0                               # (GH,)

    # block-diagonal decoder weights
    wd1_bd = jnp.zeros((N * Hs, N * 2 * Hs), jnp.float32)
    wd2_bd = jnp.zeros((N * 2 * Hs, N * Hs), jnp.float32)
    for n in range(N):
        wd1_bd = wd1_bd.at[n * Hs:(n + 1) * Hs, n * 2 * Hs:(n + 1) * 2 * Hs].set(p["wd1"][n])
        wd2_bd = wd2_bd.at[n * 2 * Hs:(n + 1) * 2 * Hs, n * Hs:(n + 1) * Hs].set(p["wd2"][n])

    p128 = jnp.zeros((P128_ROWS, 128), jnp.float32)
    p128 = p128.at[ROW_WFOLD:ROW_WFOLD + 32].set(w_fold_pad.reshape(32, GH))
    p128 = p128.at[ROW_BFOLD].set(b_fold)
    p128 = p128.at[ROW_B1].set(b1)
    p128 = p128.at[ROW_BD2].set(p["bd2"].reshape(-1))
    p128 = p128.at[ROW_BD3, 0:N].set(p["bd3"][:, 0])
    p128 = p128.at[ROW_WD3].set(p["wd3"].reshape(-1))
    p128 = p128.at[ROW_WHH0:ROW_WHH0 + Hs].set(whh0)
    p128 = p128.at[ROW_WIH1:ROW_WIH1 + Hs].set(wih1)
    p128 = p128.at[ROW_WHH1:ROW_WHH1 + Hs].set(whh1)
    p128 = p128.at[ROW_WD2:ROW_WD2 + 2 * N * Hs].set(wd2_bd)

    p256 = jnp.zeros((P256_ROWS, 256), jnp.float32)
    p256 = p256.at[ROW_WD1:ROW_WD1 + N * Hs].set(wd1_bd)
    p256 = p256.at[ROW_BD1].set(p["bd1"].reshape(-1))
    return p128, p256


# --------------------------- deterministic init -------------------------------
def init_params(key):
    N, Hs, L = INPUT_SIZE, HIDDEN_SIZE, NUM_LAYERS
    ks = jax.random.split(key, 12)

    def w(k, shape, fan_in):
        return jax.random.normal(k, shape, jnp.float32) / math.sqrt(fan_in)

    # mask: deterministic binary pattern with diagonal forced to 1 (as in __init__)
    ii = jnp.arange(N)[:, None]
    jj = jnp.arange(N)[None, :]
    mask = ((ii + jj) % 2 == 0).astype(jnp.float32)
    mask = jnp.where(jnp.eye(N, dtype=bool), 1.0, mask)

    p = dict(
        mask=mask,
        w_emb=w(ks[0], (N, Hs), N), b_emb=w(ks[1], (1, Hs), Hs),
        # LSTM gates packed [i, f, g, o] along the last axis; b = b_ih + b_hh folded
        w_ih=w(ks[2], (L, Hs, 4 * Hs), Hs),
        w_hh=w(ks[3], (L, Hs, 4 * Hs), Hs),
        b_lstm=w(ks[4], (L, 4 * Hs), Hs),
        # per-head decoder MLP weights stacked on a leading head axis
        wd1=w(ks[5], (N, Hs, 2 * Hs), Hs), bd1=w(ks[6], (N, 2 * Hs), Hs),
        wd2=w(ks[7], (N, 2 * Hs, Hs), 2 * Hs), bd2=w(ks[8], (N, Hs), 2 * Hs),
        wd3=w(ks[9], (N, Hs), Hs), bd3=w(ks[10], (N, 1), Hs),
    )
    return p


# --------------------------- pure-JAX reference --------------------------------
def reference_forward(x, p):
    B, S, _ = x.shape
    outs = []
    for i in range(INPUT_SIZE):
        xm = x * p["mask"][i][None, None, :]
        seq = xm @ p["w_emb"] + p["b_emb"]                 # (B, S, H)
        for l in range(NUM_LAYERS):
            hh = jnp.zeros((B, H), jnp.float32)
            cc = jnp.zeros((B, H), jnp.float32)
            ys = []
            for t in range(S):
                g = seq[:, t] @ p["w_ih"][l] + hh @ p["w_hh"][l] + p["b_lstm"][l]
                i_g = _sigmoid(g[:, 0 * H:1 * H])
                f_g = _sigmoid(g[:, 1 * H:2 * H])
                g_g = jnp.tanh(g[:, 2 * H:3 * H])
                o_g = _sigmoid(g[:, 3 * H:4 * H])
                cc = f_g * cc + i_g * g_g
                hh = o_g * jnp.tanh(cc)
                ys.append(hh)
            seq = jnp.stack(ys, axis=1)
        hl = seq[:, -1]
        d = jnp.maximum(hl @ p["wd1"][i] + p["bd1"][i], 0.0)
        d = jnp.maximum(d @ p["wd2"][i] + p["bd2"][i], 0.0)
        outs.append(d @ p["wd3"][i][:, None] + p["bd3"][i])   # (B, 1)
    return jnp.concatenate(outs, axis=1)                       # (B, N)


if __name__ == "__main__":
    key = jax.random.PRNGKey(0)
    kx, kp = jax.random.split(key)
    x = jax.random.normal(kx, (BATCH, SEQ, INPUT_SIZE), jnp.float32)
    params = init_params(kp)
    p128, p256 = pack_params(params)           # one-time host-side packing

    out = share_lstm_forward(x, p128, p256)
    out = jax.block_until_ready(out)

    ref = reference_forward(x, params)
    assert out.shape == (BATCH, INPUT_SIZE), out.shape
    assert jnp.allclose(out, ref, rtol=1e-4, atol=1e-4), (out, ref)
    print("KERNEL_OK")
</pallas_src>

<mosaic_0001>
module attributes {stable_mosaic.version = 11 : i64} {
  func.func @share_lstm_kernel(%arg0: memref<2x8x4xf32, #tpu.memory_space<vmem>>, %arg1: memref<392x128xf32, #tpu.memory_space<vmem>>, %arg2: memref<136x256xf32, #tpu.memory_space<vmem>>, %arg3: memref<2x4xf32, #tpu.memory_space<vmem>>) attributes {dimension_semantics = [], scalar_prefetch = 0 : i64, scratch_operands = 0 : i64, tpu.core_type = #tpu.core_type<tc>} {
    %c0 = arith.constant 0 : index
    %c0_0 = arith.constant 0 : index
    %c0_1 = arith.constant 0 : index
    %0 = vector.load %arg0[%c0, %c0_0, %c0_1] : memref<2x8x4xf32, #tpu.memory_space<vmem>>, vector<2x8x4xf32>
    %1 = vector.shape_cast %0 : vector<2x8x4xf32> to vector<16x4xf32>
    %cst = arith.constant 0.000000e+00 : f32
    %2 = vector.broadcast %cst : f32 to vector<16x4xf32>
    %3 = tpu.concatenate %1, %2 in 1 : vector<16x4xf32>, vector<16x4xf32> -> vector<16x8xf32>
    %c32 = arith.constant 32 : index
    %c0_2 = arith.constant 0 : index
    %4 = vector.load %arg1[%c32, %c0_2] : memref<392x128xf32, #tpu.memory_space<vmem>>, vector<1x128xf32>
    %c0_3 = arith.constant 0 : index
    %c0_4 = arith.constant 0 : index
    %5 = vector.load %arg1[%c0_3, %c0_4] : memref<392x128xf32, #tpu.memory_space<vmem>>, vector<8x128xf32>
    %cst_5 = arith.constant dense<0.000000e+00> : vector<16x128xf32>
    %6 = tpu.matmul %3, %5, %cst_5 {dimension_numbers = #tpu.dot_dimension_numbers<[1], [0], [0], [1], [0, 0, 1, 1], [], []>} : vector<16x8xf32>, vector<8x128xf32>, vector<16x128xf32> -> vector<16x128xf32>
    %c8 = arith.constant 8 : index
    %c0_6 = arith.constant 0 : index
    %7 = vector.load %arg1[%c8, %c0_6] : memref<392x128xf32, #tpu.memory_space<vmem>>, vector<8x128xf32>
    %cst_7 = arith.constant dense<0.000000e+00> : vector<16x128xf32>
    %8 = tpu.matmul %3, %7, %cst_7 {dimension_numbers = #tpu.dot_dimension_numbers<[1], [0], [0], [1], [0, 0, 1, 1], [], []>} : vector<16x8xf32>, vector<8x128xf32>, vector<16x128xf32> -> vector<16x128xf32>
    %c16 = arith.constant 16 : index
    %c0_8 = arith.constant 0 : index
    %9 = vector.load %arg1[%c16, %c0_8] : memref<392x128xf32, #tpu.memory_space<vmem>>, vector<8x128xf32>
    %cst_9 = arith.constant dense<0.000000e+00> : vector<16x128xf32>
    %10 = tpu.matmul %3, %9, %cst_9 {dimension_numbers = #tpu.dot_dimension_numbers<[1], [0], [0], [1], [0, 0, 1, 1], [], []>} : vector<16x8xf32>, vector<8x128xf32>, vector<16x128xf32> -> vector<16x128xf32>
    %c24 = arith.constant 24 : index
    %c0_10 = arith.constant 0 : index
    %11 = vector.load %arg1[%c24, %c0_10] : memref<392x128xf32, #tpu.memory_space<vmem>>, vector<8x128xf32>
    %cst_11 = arith.constant dense<0.000000e+00> : vector<16x128xf32>
    %12 = tpu.matmul %3, %11, %cst_11 {dimension_numbers = #tpu.dot_dimension_numbers<[1], [0], [0], [1], [0, 0, 1, 1], [], []>} : vector<16x8xf32>, vector<8x128xf32>, vector<16x128xf32> -> vector<16x128xf32>
    %13 = tpu.concatenate %6, %8, %10, %12 in 0 : vector<16x128xf32>, vector<16x128xf32>, vector<16x128xf32>, vector<16x128xf32> -> vector<64x128xf32>
    %14 = vector.broadcast %4 : vector<1x128xf32> to vector<64x128xf32>
    %15 = arith.addf %13, %14 : vector<64x128xf32>
    %16 = vector.shape_cast %15 : vector<64x128xf32> to vector<8x8x128xf32>
    %17 = tpu.transpose %16, [1, 0, 2] : vector<8x8x128xf32> -> vector<8x8x128xf32>
    %18 = tpu.iota {dimensions = array<i32: 1>} : vector<8x128xi32>
    %c64_i32 = arith.constant 64 : i32
    %19 = vector.broadcast %c64_i32 : i32 to vector<8x128xi32>
    %20 = arith.cmpi sge, %18, %19 : vector<8x128xi32>
    %c96_i32 = arith.constant 96 : i32
    %21 = vector.broadcast %c96_i32 : i32 to vector<8x128xi32>
    %22 = arith.cmpi slt, %18, %21 : vector<8x128xi32>
    %23 = arith.andi %20, %22 : vector<8x128xi1>
    %cst_12 = arith.constant 1.000000e+00 : f32
    %cst_13 = arith.constant 5.000000e-01 : f32
    %24 = vector.broadcast %cst_12 : f32 to vector<8x128xf32>
    %25 = vector.broadcast %cst_13 : f32 to vector<8x128xf32>
    %26 = arith.select %23, %24, %25 : vector<8x128xi1>, vector<8x128xf32>
    %cst_14 = arith.constant 0.000000e+00 : f32
    %cst_15 = arith.constant 5.000000e-01 : f32
    %27 = vector.broadcast %cst_14 : f32 to vector<8x128xf32>
    %28 = vector.broadcast %cst_15 : f32 to vector<8x128xf32>
    %29 = arith.select %23, %27, %28 : vector<8x128xi1>, vector<8x128xf32>
    %c40 = arith.constant 40 : index
    %c0_16 = arith.constant 0 : index
    %30 = vector.load %arg1[%c40, %c0_16] : memref<392x128xf32, #tpu.memory_space<vmem>>, vector<32x128xf32>
    %c72 = arith.constant 72 : index
    %c0_17 = arith.constant 0 : index
    %31 = vector.load %arg1[%c72, %c0_17] : memref<392x128xf32, #tpu.memory_space<vmem>>, vector<32x128xf32>
    %c104 = arith.constant 104 : index
    %c0_18 = arith.constant 0 : index
    %32 = vector.load %arg1[%c104, %c0_18] : memref<392x128xf32, #tpu.memory_space<vmem>>, vector<32x128xf32>
    %c33 = arith.constant 33 : index
    %c0_19 = arith.constant 0 : index
    %33 = vector.load %arg1[%c33, %c0_19] : memref<392x128xf32, #tpu.memory_space<vmem>>, vector<1x128xf32>
    %cst_20 = arith.constant 0.000000e+00 : f32
    %34 = vector.broadcast %cst_20 : f32 to vector<8x32xf32>
    %cst_21 = arith.constant 0.000000e+00 : f32
    %35 = vector.broadcast %cst_21 : f32 to vector<8x32xf32>
    %cst_22 = arith.constant 0.000000e+00 : f32
    %36 = vector.broadcast %cst_22 : f32 to vector<8x32xf32>
    %cst_23 = arith.constant 0.000000e+00 : f32
    %37 = vector.broadcast %cst_23 : f32 to vector<8x32xf32>
    %38 = vector.extract_strided_slice %17 {offsets = [0, 0, 0], sizes = [1, 8, 128], strides = [1, 1, 1]} : vector<8x8x128xf32> to vector<1x8x128xf32>
    %39 = vector.shape_cast %38 : vector<1x8x128xf32> to vector<8x128xf32>
    %cst_24 = arith.constant dense<0.000000e+00> : vector<8x128xf32>
    %40 = tpu.matmul %34, %30, %cst_24 {dimension_numbers = #tpu.dot_dimension_numbers<[1], [0], [0], [1], [0, 0, 1, 1], [], []>} : vector<8x32xf32>, vector<32x128xf32>, vector<8x128xf32> -> vector<8x128xf32>
    %41 = arith.addf %39, %40 : vector<8x128xf32>
    %42 = arith.mulf %41, %26 : vector<8x128xf32>
    %43 = math.tanh %42 : vector<8x128xf32>
    %44 = arith.mulf %43, %26 : vector<8x128xf32>
    %45 = arith.addf %44, %29 : vector<8x128xf32>
    %46 = vector.extract_strided_slice %45 {offsets = [0, 32], sizes = [8, 32], strides = [1, 1]} : vector<8x128xf32> to vector<8x32xf32>
    %47 = arith.mulf %46, %35 : vector<8x32xf32>
    %48 = vector.extract_strided_slice %45 {offsets = [0, 0], sizes = [8, 32], strides = [1, 1]} : vector<8x128xf32> to vector<8x32xf32>
    %49 = vector.extract_strided_slice %45 {offsets = [0, 64], sizes = [8, 32], strides = [1, 1]} : vector<8x128xf32> to vector<8x32xf32>
    %50 = arith.mulf %48, %49 : vector<8x32xf32>
    %51 = arith.addf %47, %50 : vector<8x32xf32>
    %52 = vector.extract_strided_slice %45 {offsets = [0, 96], sizes = [8, 32], strides = [1, 1]} : vector<8x128xf32> to vector<8x32xf32>
    %53 = math.tanh %51 : vector<8x32xf32>
    %54 = arith.mulf %52, %53 : vector<8x32xf32>
    %cst_25 = arith.constant dense<0.000000e+00> : vector<8x128xf32>
    %55 = tpu.matmul %54, %31, %cst_25 {dimension_numbers = #tpu.dot_dimension_numbers<[1], [0], [0], [1], [0, 0, 1, 1], [], []>} : vector<8x32xf32>, vector<32x128xf32>, vector<8x128xf32> -> vector<8x128xf32>
    %cst_26 = arith.constant dense<0.000000e+00> : vector<8x128xf32>
    %56 = tpu.matmul %36, %32, %cst_26 {dimension_numbers = #tpu.dot_dimension_numbers<[1], [0], [0], [1], [0, 0, 1, 1], [], []>} : vector<8x32xf32>, vector<32x128xf32>, vector<8x128xf32> -> vector<8x128xf32>
    %57 = arith.addf %55, %56 : vector<8x128xf32>
    %58 = vector.broadcast %33 : vector<1x128xf32> to vector<8x128xf32>
    %59 = arith.addf %57, %58 : vector<8x128xf32>
    %60 = arith.mulf %59, %26 : vector<8x128xf32>
    %61 = math.tanh %60 : vector<8x128xf32>
    %62 = arith.mulf %61, %26 : vector<8x128xf32>
    %63 = arith.addf %62, %29 : vector<8x128xf32>
    %64 = vector.extract_strided_slice %63 {offsets = [0, 32], sizes = [8, 32], strides = [1, 1]} : vector<8x128xf32> to vector<8x32xf32>
    %65 = arith.mulf %64, %37 : vector<8x32xf32>
    %66 = vector.extract_strided_slice %63 {offsets = [0, 0], sizes = [8, 32], strides = [1, 1]} : vector<8x128xf32> to vector<8x32xf32>
    %67 = vector.extract_strided_slice %63 {offsets = [0, 64], sizes = [8, 32], strides = [1, 1]} : vector<8x128xf32> to vector<8x32xf32>
    %68 = arith.mulf %66, %67 : vector<8x32xf32>
    %69 = arith.addf %65, %68 : vector<8x32xf32>
    %70 = vector.extract_strided_slice %63 {offsets = [0, 96], sizes = [8, 32], strides = [1, 1]} : vector<8x128xf32> to vector<8x32xf32>
    %71 = math.tanh %69 : vector<8x32xf32>
    %72 = arith.mulf %70, %71 : vector<8x32xf32>
    %73 = vector.extract_strided_slice %17 {offsets = [1, 0, 0], sizes = [1, 8, 128], strides = [1, 1, 1]} : vector<8x8x128xf32> to vector<1x8x128xf32>
    %74 = vector.shape_cast %73 : vector<1x8x128xf32> to vector<8x128xf32>
    %cst_27 = arith.constant dense<0.000000e+00> : vector<8x128xf32>
    %75 = tpu.matmul %54, %30, %cst_27 {dimension_numbers = #tpu.dot_dimension_numbers<[1], [0], [0], [1], [0, 0, 1, 1], [], []>} : vector<8x32xf32>, vector<32x128xf32>, vector<8x128xf32> -> vector<8x128xf32>
    %76 = arith.addf %74, %75 : vector<8x128xf32>
    %77 = arith.mulf %76, %26 : vector<8x128xf32>
    %78 = math.tanh %77 : vector<8x128xf32>
    %79 = arith.mulf %78, %26 : vector<8x128xf32>
    %80 = arith.addf %79, %29 : vector<8x128xf32>
    %81 = vector.extract_strided_slice %80 {offsets = [0, 32], sizes = [8, 32], strides = [1, 1]} : vector<8x128xf32> to vector<8x32xf32>
    %82 = arith.mulf %81, %51 : vector<8x32xf32>
    %83 = vector.extract_strided_slice %80 {offsets = [0, 0], sizes = [8, 32], strides = [1, 1]} : vector<8x128xf32> to vector<8x32xf32>
    %84 = vector.extract_strided_slice %80 {offsets = [0, 64], sizes = [8, 32], strides = [1, 1]} : vector<8x128xf32> to vector<8x32xf32>
    %85 = arith.mulf %83, %84 : vector<8x32xf32>
    %86 = arith.addf %82, %85 : vector<8x32xf32>
    %87 = vector.extract_strided_slice %80 {offsets = [0, 96], sizes = [8, 32], strides = [1, 1]} : vector<8x128xf32> to vector<8x32xf32>
    %88 = math.tanh %86 : vector<8x32xf32>
    %89 = arith.mulf %87, %88 : vector<8x32xf32>
    %cst_28 = arith.constant dense<0.000000e+00> : vector<8x128xf32>
    %90 = tpu.matmul %89, %31, %cst_28 {dimension_numbers = #tpu.dot_dimension_numbers<[1], [0], [0], [1], [0, 0, 1, 1], [], []>} : vector<8x32xf32>, vector<32x128xf32>, vector<8x128xf32> -> vector<8x128xf32>
    %cst_29 = arith.constant dense<0.000000e+00> : vector<8x128xf32>
    %91 = tpu.matmul %72, %32, %cst_29 {dimension_numbers = #tpu.dot_dimension_numbers<[1], [0], [0], [1], [0, 0, 1, 1], [], []>} : vector<8x32xf32>, vector<32x128xf32>, vector<8x128xf32> -> vector<8x128xf32>
    %92 = arith.addf %90, %91 : vector<8x128xf32>
    %93 = vector.broadcast %33 : vector<1x128xf32> to vector<8x128xf32>
    %94 = arith.addf %92, %93 : vector<8x128xf32>
    %95 = arith.mulf %94, %26 : vector<8x128xf32>
    %96 = math.tanh %95 : vector<8x128xf32>
    %97 = arith.mulf %96, %26 : vector<8x128xf32>
    %98 = arith.addf %97, %29 : vector<8x128xf32>
    %99 = vector.extract_strided_slice %98 {offsets = [0, 32], sizes = [8, 32], strides = [1, 1]} : vector<8x128xf32> to vector<8x32xf32>
    %100 = arith.mulf %99, %69 : vector<8x32xf32>
    %101 = vector.extract_strided_slice %98 {offsets = [0, 0], sizes = [8, 32], strides = [1, 1]} : vector<8x128xf32> to vector<8x32xf32>
    %102 = vector.extract_strided_slice %98 {offsets = [0, 64], sizes = [8, 32], strides = [1, 1]} : vector<8x128xf32> to vector<8x32xf32>
    %103 = arith.mulf %101, %102 : vector<8x32xf32>
    %104 = arith.addf %100, %103 : vector<8x32xf32>
    %105 = vector.extract_strided_slice %98 {offsets = [0, 96], sizes = [8, 32], strides = [1, 1]} : vector<8x128xf32> to vector<8x32xf32>
    %106 = math.tanh %104 : vector<8x32xf32>
    %107 = arith.mulf %105, %106 : vector<8x32xf32>
    %108 = vector.extract_strided_slice %17 {offsets = [2, 0, 0], sizes = [1, 8, 128], strides = [1, 1, 1]} : vector<8x8x128xf32> to vector<1x8x128xf32>
    %109 = vector.shape_cast %108 : vector<1x8x128xf32> to vector<8x128xf32>
    %cst_30 = arith.constant dense<0.000000e+00> : vector<8x128xf32>
    %110 = tpu.matmul %89, %30, %cst_30 {dimension_numbers = #tpu.dot_dimension_numbers<[1], [0], [0], [1], [0, 0, 1, 1], [], []>} : vector<8x32xf32>, vector<32x128xf32>, vector<8x128xf32> -> vector<8x128xf32>
    %111 = arith.addf %109, %110 : vector<8x128xf32>
    %112 = arith.mulf %111, %26 : vector<8x128xf32>
    %113 = math.tanh %112 : vector<8x128xf32>
    %114 = arith.mulf %113, %26 : vector<8x128xf32>
    %115 = arith.addf %114, %29 : vector<8x128xf32>
    %116 = vector.extract_strided_slice %115 {offsets = [0, 32], sizes = [8, 32], strides = [1, 1]} : vector<8x128xf32> to vector<8x32xf32>
    %117 = arith.mulf %116, %86 : vector<8x32xf32>
    %118 = vector.extract_strided_slice %115 {offsets = [0, 0], sizes = [8, 32], strides = [1, 1]} : vector<8x128xf32> to vector<8x32xf32>
    %119 = vector.extract_strided_slice %115 {offsets = [0, 64], sizes = [8, 32], strides = [1, 1]} : vector<8x128xf32> to vector<8x32xf32>
    %120 = arith.mulf %118, %119 : vector<8x32xf32>
    %121 = arith.addf %117, %120 : vector<8x32xf32>
    %122 = vector.extract_strided_slice %115 {offsets = [0, 96], sizes = [8, 32], strides = [1, 1]} : vector<8x128xf32> to vector<8x32xf32>
    %123 = math.tanh %121 : vector<8x32xf32>
    %124 = arith.mulf %122, %123 : vector<8x32xf32>
    %cst_31 = arith.constant dense<0.000000e+00> : vector<8x128xf32>
    %125 = tpu.matmul %124, %31, %cst_31 {dimension_numbers = #tpu.dot_dimension_numbers<[1], [0], [0], [1], [0, 0, 1, 1], [], []>} : vector<8x32xf32>, vector<32x128xf32>, vector<8x128xf32> -> vector<8x128xf32>
    %cst_32 = arith.constant dense<0.000000e+00> : vector<8x128xf32>
    %126 = tpu.matmul %107, %32, %cst_32 {dimension_numbers = #tpu.dot_dimension_numbers<[1], [0], [0], [1], [0, 0, 1, 1], [], []>} : vector<8x32xf32>, vector<32x128xf32>, vector<8x128xf32> -> vector<8x128xf32>
    %127 = arith.addf %125, %126 : vector<8x128xf32>
    %128 = vector.broadcast %33 : vector<1x128xf32> to vector<8x128xf32>
    %129 = arith.addf %127, %128 : vector<8x128xf32>
    %130 = arith.mulf %129, %26 : vector<8x128xf32>
    %131 = math.tanh %130 : vector<8x128xf32>
    %132 = arith.mulf %131, %26 : vector<8x128xf32>
    %133 = arith.addf %132, %29 : vector<8x128xf32>
    %134 = vector.extract_strided_slice %133 {offsets = [0, 32], sizes = [8, 32], strides = [1, 1]} : vector<8x128xf32> to vector<8x32xf32>
    %135 = arith.mulf %134, %104 : vector<8x32xf32>
    %136 = vector.extract_strided_slice %133 {offsets = [0, 0], sizes = [8, 32], strides = [1, 1]} : vector<8x128xf32> to vector<8x32xf32>
    %137 = vector.extract_strided_slice %133 {offsets = [0, 64], sizes = [8, 32], strides = [1, 1]} : vector<8x128xf32> to vector<8x32xf32>
    %138 = arith.mulf %136, %137 : vector<8x32xf32>
    %139 = arith.addf %135, %138 : vector<8x32xf32>
    %140 = vector.extract_strided_slice %133 {offsets = [0, 96], sizes = [8, 32], strides = [1, 1]} : vector<8x128xf32> to vector<8x32xf32>
    %141 = math.tanh %139 : vector<8x32xf32>
    %142 = arith.mulf %140, %141 : vector<8x32xf32>
    %143 = vector.extract_strided_slice %17 {offsets = [3, 0, 0], sizes = [1, 8, 128], strides = [1, 1, 1]} : vector<8x8x128xf32> to vector<1x8x128xf32>
    %144 = vector.shape_cast %143 : vector<1x8x128xf32> to vector<8x128xf32>
    %cst_33 = arith.constant dense<0.000000e+00> : vector<8x128xf32>
    %145 = tpu.matmul %124, %30, %cst_33 {dimension_numbers = #tpu.dot_dimension_numbers<[1], [0], [0], [1], [0, 0, 1, 1], [], []>} : vector<8x32xf32>, vector<32x128xf32>, vector<8x128xf32> -> vector<8x128xf32>
    %146 = arith.addf %144, %145 : vector<8x128xf32>
    %147 = arith.mulf %146, %26 : vector<8x128xf32>
    %148 = math.tanh %147 : vector<8x128xf32>
    %149 = arith.mulf %148, %26 : vector<8x128xf32>
    %150 = arith.addf %149, %29 : vector<8x128xf32>
    %151 = vector.extract_strided_slice %150 {offsets = [0, 32], sizes = [8, 32], strides = [1, 1]} : vector<8x128xf32> to vector<8x32xf32>
    %152 = arith.mulf %151, %121 : vector<8x32xf32>
    %153 = vector.extract_strided_slice %150 {offsets = [0, 0], sizes = [8, 32], strides = [1, 1]} : vector<8x128xf32> to vector<8x32xf32>
    %154 = vector.extract_strided_slice %150 {offsets = [0, 64], sizes = [8, 32], strides = [1, 1]} : vector<8x128xf32> to vector<8x32xf32>
    %155 = arith.mulf %153, %154 : vector<8x32xf32>
    %156 = arith.addf %152, %155 : vector<8x32xf32>
    %157 = vector.extract_strided_slice %150 {offsets = [0, 96], sizes = [8, 32], strides = [1, 1]} : vector<8x128xf32> to vector<8x32xf32>
    %158 = math.tanh %156 : vector<8x32xf32>
    %159 = arith.mulf %157, %158 : vector<8x32xf32>
    %cst_34 = arith.constant dense<0.000000e+00> : vector<8x128xf32>
    %160 = tpu.matmul %159, %31, %cst_34 {dimension_numbers = #tpu.dot_dimension_numbers<[1], [0], [0], [1], [0, 0, 1, 1], [], []>} : vector<8x32xf32>, vector<32x128xf32>, vector<8x128xf32> -> vector<8x128xf32>
    %cst_35 = arith.constant dense<0.000000e+00> : vector<8x128xf32>
    %161 = tpu.matmul %142, %32, %cst_35 {dimension_numbers = #tpu.dot_dimension_numbers<[1], [0], [0], [1], [0, 0, 1, 1], [], []>} : vector<8x32xf32>, vector<32x128xf32>, vector<8x128xf32> -> vector<8x128xf32>
    %162 = arith.addf %160, %161 : vector<8x128xf32>
    %163 = vector.broadcast %33 : vector<1x128xf32> to vector<8x128xf32>
    %164 = arith.addf %162, %163 : vector<8x128xf32>
    %165 = arith.mulf %164, %26 : vector<8x128xf32>
    %166 = math.tanh %165 : vector<8x128xf32>
    %167 = arith.mulf %166, %26 : vector<8x128xf32>
    %168 = arith.addf %167, %29 : vector<8x128xf32>
    %169 = vector.extract_strided_slice %168 {offsets = [0, 32], sizes = [8, 32], strides = [1, 1]} : vector<8x128xf32> to vector<8x32xf32>
    %170 = arith.mulf %169, %139 : vector<8x32xf32>
    %171 = vector.extract_strided_slice %168 {offsets = [0, 0], sizes = [8, 32], strides = [1, 1]} : vector<8x128xf32> to vector<8x32xf32>
    %172 = vector.extract_strided_slice %168 {offsets = [0, 64], sizes = [8, 32], strides = [1, 1]} : vector<8x128xf32> to vector<8x32xf32>
    %173 = arith.mulf %171, %172 : vector<8x32xf32>
    %174 = arith.addf %170, %173 : vector<8x32xf32>
    %175 = vector.extract_strided_slice %168 {offsets = [0, 96], sizes = [8, 32], strides = [1, 1]} : vector<8x128xf32> to vector<8x32xf32>
    %176 = math.tanh %174 : vector<8x32xf32>
    %177 = arith.mulf %175, %176 : vector<8x32xf32>
    %178 = vector.extract_strided_slice %17 {offsets = [4, 0, 0], sizes = [1, 8, 128], strides = [1, 1, 1]} : vector<8x8x128xf32> to vector<1x8x128xf32>
    %179 = vector.shape_cast %178 : vector<1x8x128xf32> to vector<8x128xf32>
    %cst_36 = arith.constant dense<0.000000e+00> : vector<8x128xf32>
    %180 = tpu.matmul %159, %30, %cst_36 {dimension_numbers = #tpu.dot_dimension_numbers<[1], [0], [0], [1], [0, 0, 1, 1], [], []>} : vector<8x32xf32>, vector<32x128xf32>, vector<8x128xf32> -> vector<8x128xf32>
    %181 = arith.addf %179, %180 : vector<8x128xf32>
    %182 = arith.mulf %181, %26 : vector<8x128xf32>
    %183 = math.tanh %182 : vector<8x128xf32>
    %184 = arith.mulf %183, %26 : vector<8x128xf32>
    %185 = arith.addf %184, %29 : vector<8x128xf32>
    %186 = vector.extract_strided_slice %185 {offsets = [0, 32], sizes = [8, 32], strides = [1, 1]} : vector<8x128xf32> to vector<8x32xf32>
    %187 = arith.mulf %186, %156 : vector<8x32xf32>
    %188 = vector.extract_strided_slice %185 {offsets = [0, 0], sizes = [8, 32], strides = [1, 1]} : vector<8x128xf32> to vector<8x32xf32>
    %189 = vector.extract_strided_slice %185 {offsets = [0, 64], sizes = [8, 32], strides = [1, 1]} : vector<8x128xf32> to vector<8x32xf32>
    %190 = arith.mulf %188, %189 : vector<8x32xf32>
    %191 = arith.addf %187, %190 : vector<8x32xf32>
    %192 = vector.extract_strided_slice %185 {offsets = [0, 96], sizes = [8, 32], strides = [1, 1]} : vector<8x128xf32> to vector<8x32xf32>
    %193 = math.tanh %191 : vector<8x32xf32>
    %194 = arith.mulf %192, %193 : vector<8x32xf32>
    %cst_37 = arith.constant dense<0.000000e+00> : vector<8x128xf32>
    %195 = tpu.matmul %194, %31, %cst_37 {dimension_numbers = #tpu.dot_dimension_numbers<[1], [0], [0], [1], [0, 0, 1, 1], [], []>} : vector<8x32xf32>, vector<32x128xf32>, vector<8x128xf32> -> vector<8x128xf32>
    %cst_38 = arith.constant dense<0.000000e+00> : vector<8x128xf32>
    %196 = tpu.matmul %177, %32, %cst_38 {dimension_numbers = #tpu.dot_dimension_numbers<[1], [0], [0], [1], [0, 0, 1, 1], [], []>} : vector<8x32xf32>, vector<32x128xf32>, vector<8x128xf32> -> vector<8x128xf32>
    %197 = arith.addf %195, %196 : vector<8x128xf32>
    %198 = vector.broadcast %33 : vector<1x128xf32> to vector<8x128xf32>
    %199 = arith.addf %197, %198 : vector<8x128xf32>
    %200 = arith.mulf %199, %26 : vector<8x128xf32>
    %201 = math.tanh %200 : vector<8x128xf32>
    %202 = arith.mulf %201, %26 : vector<8x128xf32>
    %203 = arith.addf %202, %29 : vector<8x128xf32>
    %204 = vector.extract_strided_slice %203 {offsets = [0, 32], sizes = [8, 32], strides = [1, 1]} : vector<8x128xf32> to vector<8x32xf32>
    %205 = arith.mulf %204, %174 : vector<8x32xf32>
    %206 = vector.extract_strided_slice %203 {offsets = [0, 0], sizes = [8, 32], strides = [1, 1]} : vector<8x128xf32> to vector<8x32xf32>
    %207 = vector.extract_strided_slice %203 {offsets = [0, 64], sizes = [8, 32], strides = [1, 1]} : vector<8x128xf32> to vector<8x32xf32>
    %208 = arith.mulf %206, %207 : vector<8x32xf32>
    %209 = arith.addf %205, %208 : vector<8x32xf32>
    %210 = vector.extract_strided_slice %203 {offsets = [0, 96], sizes = [8, 32], strides = [1, 1]} : vector<8x128xf32> to vector<8x32xf32>
    %211 = math.tanh %209 : vector<8x32xf32>
    %212 = arith.mulf %210, %211 : vector<8x32xf32>
    %213 = vector.extract_strided_slice %17 {offsets = [5, 0, 0], sizes = [1, 8, 128], strides = [1, 1, 1]} : vector<8x8x128xf32> to vector<1x8x128xf32>
    %214 = vector.shape_cast %213 : vector<1x8x128xf32> to vector<8x128xf32>
    %cst_39 = arith.constant dense<0.000000e+00> : vector<8x128xf32>
    %215 = tpu.matmul %194, %30, %cst_39 {dimension_numbers = #tpu.dot_dimension_numbers<[1], [0], [0], [1], [0, 0, 1, 1], [], []>} : vector<8x32xf32>, vector<32x128xf32>, vector<8x128xf32> -> vector<8x128xf32>
    %216 = arith.addf %214, %215 : vector<8x128xf32>
    %217 = arith.mulf %216, %26 : vector<8x128xf32>
    %218 = math.tanh %217 : vector<8x128xf32>
    %219 = arith.mulf %218, %26 : vector<8x128xf32>
    %220 = arith.addf %219, %29 : vector<8x128xf32>
    %221 = vector.extract_strided_slice %220 {offsets = [0, 32], sizes = [8, 32], strides = [1, 1]} : vector<8x128xf32> to vector<8x32xf32>
    %222 = arith.mulf %221, %191 : vector<8x32xf32>
    %223 = vector.extract_strided_slice %220 {offsets = [0, 0], sizes = [8, 32], strides = [1, 1]} : vector<8x128xf32> to vector<8x32xf32>
    %224 = vector.extract_strided_slice %220 {offsets = [0, 64], sizes = [8, 32], strides = [1, 1]} : vector<8x128xf32> to vector<8x32xf32>
    %225 = arith.mulf %223, %224 : vector<8x32xf32>
    %226 = arith.addf %222, %225 : vector<8x32xf32>
    %227 = vector.extract_strided_slice %220 {offsets = [0, 96], sizes = [8, 32], strides = [1, 1]} : vector<8x128xf32> to vector<8x32xf32>
    %228 = math.tanh %226 : vector<8x32xf32>
    %229 = arith.mulf %227, %228 : vector<8x32xf32>
    %cst_40 = arith.constant dense<0.000000e+00> : vector<8x128xf32>
    %230 = tpu.matmul %229, %31, %cst_40 {dimension_numbers = #tpu.dot_dimension_numbers<[1], [0], [0], [1], [0, 0, 1, 1], [], []>} : vector<8x32xf32>, vector<32x128xf32>, vector<8x128xf32> -> vector<8x128xf32>
    %cst_41 = arith.constant dense<0.000000e+00> : vector<8x128xf32>
    %231 = tpu.matmul %212, %32, %cst_41 {dimension_numbers = #tpu.dot_dimension_numbers<[1], [0], [0], [1], [0, 0, 1, 1], [], []>} : vector<8x32xf32>, vector<32x128xf32>, vector<8x128xf32> -> vector<8x128xf32>
    %232 = arith.addf %230, %231 : vector<8x128xf32>
    %233 = vector.broadcast %33 : vector<1x128xf32> to vector<8x128xf32>
    %234 = arith.addf %232, %233 : vector<8x128xf32>
    %235 = arith.mulf %234, %26 : vector<8x128xf32>
    %236 = math.tanh %235 : vector<8x128xf32>
    %237 = arith.mulf %236, %26 : vector<8x128xf32>
    %238 = arith.addf %237, %29 : vector<8x128xf32>
    %239 = vector.extract_strided_slice %238 {offsets = [0, 32], sizes = [8, 32], strides = [1, 1]} : vector<8x128xf32> to vector<8x32xf32>
    %240 = arith.mulf %239, %209 : vector<8x32xf32>
    %241 = vector.extract_strided_slice %238 {offsets = [0, 0], sizes = [8, 32], strides = [1, 1]} : vector<8x128xf32> to vector<8x32xf32>
    %242 = vector.extract_strided_slice %238 {offsets = [0, 64], sizes = [8, 32], strides = [1, 1]} : vector<8x128xf32> to vector<8x32xf32>
    %243 = arith.mulf %241, %242 : vector<8x32xf32>
    %244 = arith.addf %240, %243 : vector<8x32xf32>
    %245 = vector.extract_strided_slice %238 {offsets = [0, 96], sizes = [8, 32], strides = [1, 1]} : vector<8x128xf32> to vector<8x32xf32>
    %246 = math.tanh %244 : vector<8x32xf32>
    %247 = arith.mulf %245, %246 : vector<8x32xf32>
    %248 = vector.extract_strided_slice %17 {offsets = [6, 0, 0], sizes = [1, 8, 128], strides = [1, 1, 1]} : vector<8x8x128xf32> to vector<1x8x128xf32>
    %249 = vector.shape_cast %248 : vector<1x8x128xf32> to vector<8x128xf32>
    %cst_42 = arith.constant dense<0.000000e+00> : vector<8x128xf32>
    %250 = tpu.matmul %229, %30, %cst_42 {dimension_numbers = #tpu.dot_dimension_numbers<[1], [0], [0], [1], [0, 0, 1, 1], [], []>} : vector<8x32xf32>, vector<32x128xf32>, vector<8x128xf32> -> vector<8x128xf32>
    %251 = arith.addf %249, %250 : vector<8x128xf32>
    %252 = arith.mulf %251, %26 : vector<8x128xf32>
    %253 = math.tanh %252 : vector<8x128xf32>
    %254 = arith.mulf %253, %26 : vector<8x128xf32>
    %255 = arith.addf %254, %29 : vector<8x128xf32>
    %256 = vector.extract_strided_slice %255 {offsets = [0, 32], sizes = [8, 32], strides = [1, 1]} : vector<8x128xf32> to vector<8x32xf32>
    %257 = arith.mulf %256, %226 : vector<8x32xf32>
    %258 = vector.extract_strided_slice %255 {offsets = [0, 0], sizes = [8, 32], strides = [1, 1]} : vector<8x128xf32> to vector<8x32xf32>
    %259 = vector.extract_strided_slice %255 {offsets = [0, 64], sizes = [8, 32], strides = [1, 1]} : vector<8x128xf32> to vector<8x32xf32>
    %260 = arith.mulf %258, %259 : vector<8x32xf32>
    %261 = arith.addf %257, %260 : vector<8x32xf32>
    %262 = vector.extract_strided_slice %255 {offsets = [0, 96], sizes = [8, 32], strides = [1, 1]} : vector<8x128xf32> to vector<8x32xf32>
    %263 = math.tanh %261 : vector<8x32xf32>
    %264 = arith.mulf %262, %263 : vector<8x32xf32>
    %cst_43 = arith.constant dense<0.000000e+00> : vector<8x128xf32>
    %265 = tpu.matmul %264, %31, %cst_43 {dimension_numbers = #tpu.dot_dimension_numbers<[1], [0], [0], [1], [0, 0, 1, 1], [], []>} : vector<8x32xf32>, vector<32x128xf32>, vector<8x128xf32> -> vector<8x128xf32>
    %cst_44 = arith.constant dense<0.000000e+00> : vector<8x128xf32>
    %266 = tpu.matmul %247, %32, %cst_44 {dimension_numbers = #tpu.dot_dimension_numbers<[1], [0], [0], [1], [0, 0, 1, 1], [], []>} : vector<8x32xf32>, vector<32x128xf32>, vector<8x128xf32> -> vector<8x128xf32>
    %267 = arith.addf %265, %266 : vector<8x128xf32>
    %268 = vector.broadcast %33 : vector<1x128xf32> to vector<8x128xf32>
    %269 = arith.addf %267, %268 : vector<8x128xf32>
    %270 = arith.mulf %269, %26 : vector<8x128xf32>
    %271 = math.tanh %270 : vector<8x128xf32>
    %272 = arith.mulf %271, %26 : vector<8x128xf32>
    %273 = arith.addf %272, %29 : vector<8x128xf32>
    %274 = vector.extract_strided_slice %273 {offsets = [0, 32], sizes = [8, 32], strides = [1, 1]} : vector<8x128xf32> to vector<8x32xf32>
    %275 = arith.mulf %274, %244 : vector<8x32xf32>
    %276 = vector.extract_strided_slice %273 {offsets = [0, 0], sizes = [8, 32], strides = [1, 1]} : vector<8x128xf32> to vector<8x32xf32>
    %277 = vector.extract_strided_slice %273 {offsets = [0, 64], sizes = [8, 32], strides = [1, 1]} : vector<8x128xf32> to vector<8x32xf32>
    %278 = arith.mulf %276, %277 : vector<8x32xf32>
    %279 = arith.addf %275, %278 : vector<8x32xf32>
    %280 = vector.extract_strided_slice %273 {offsets = [0, 96], sizes = [8, 32], strides = [1, 1]} : vector<8x128xf32> to vector<8x32xf32>
    %281 = math.tanh %279 : vector<8x32xf32>
    %282 = arith.mulf %280, %281 : vector<8x32xf32>
    %283 = vector.extract_strided_slice %17 {offsets = [7, 0, 0], sizes = [1, 8, 128], strides = [1, 1, 1]} : vector<8x8x128xf32> to vector<1x8x128xf32>
    %284 = vector.shape_cast %283 : vector<1x8x128xf32> to vector<8x128xf32>
    %cst_45 = arith.constant dense<0.000000e+00> : vector<8x128xf32>
    %285 = tpu.matmul %264, %30, %cst_45 {dimension_numbers = #tpu.dot_dimension_numbers<[1], [0], [0], [1], [0, 0, 1, 1], [], []>} : vector<8x32xf32>, vector<32x128xf32>, vector<8x128xf32> -> vector<8x128xf32>
    %286 = arith.addf %284, %285 : vector<8x128xf32>
    %287 = arith.mulf %286, %26 : vector<8x128xf32>
    %288 = math.tanh %287 : vector<8x128xf32>
    %289 = arith.mulf %288, %26 : vector<8x128xf32>
    %290 = arith.addf %289, %29 : vector<8x128xf32>
    %291 = vector.extract_strided_slice %290 {offsets = [0, 32], sizes = [8, 32], strides = [1, 1]} : vector<8x128xf32> to vector<8x32xf32>
    %292 = arith.mulf %291, %261 : vector<8x32xf32>
    %293 = vector.extract_strided_slice %290 {offsets = [0, 0], sizes = [8, 32], strides = [1, 1]} : vector<8x128xf32> to vector<8x32xf32>
    %294 = vector.extract_strided_slice %290 {offsets = [0, 64], sizes = [8, 32], strides = [1, 1]} : vector<8x128xf32> to vector<8x32xf32>
    %295 = arith.mulf %293, %294 : vector<8x32xf32>
    %296 = arith.addf %292, %295 : vector<8x32xf32>
    %297 = vector.extract_strided_slice %290 {offsets = [0, 96], sizes = [8, 32], strides = [1, 1]} : vector<8x128xf32> to vector<8x32xf32>
    %298 = math.tanh %296 : vector<8x32xf32>
    %299 = arith.mulf %297, %298 : vector<8x32xf32>
    %cst_46 = arith.constant dense<0.000000e+00> : vector<8x128xf32>
    %300 = tpu.matmul %299, %31, %cst_46 {dimension_numbers = #tpu.dot_dimension_numbers<[1], [0], [0], [1], [0, 0, 1, 1], [], []>} : vector<8x32xf32>, vector<32x128xf32>, vector<8x128xf32> -> vector<8x128xf32>
    %cst_47 = arith.constant dense<0.000000e+00> : vector<8x128xf32>
    %301 = tpu.matmul %282, %32, %cst_47 {dimension_numbers = #tpu.dot_dimension_numbers<[1], [0], [0], [1], [0, 0, 1, 1], [], []>} : vector<8x32xf32>, vector<32x128xf32>, vector<8x128xf32> -> vector<8x128xf32>
    %302 = arith.addf %300, %301 : vector<8x128xf32>
    %303 = vector.broadcast %33 : vector<1x128xf32> to vector<8x128xf32>
    %304 = arith.addf %302, %303 : vector<8x128xf32>
    %305 = arith.mulf %304, %26 : vector<8x128xf32>
    %306 = math.tanh %305 : vector<8x128xf32>
    %307 = arith.mulf %306, %26 : vector<8x128xf32>
    %308 = arith.addf %307, %29 : vector<8x128xf32>
    %309 = vector.extract_strided_slice %308 {offsets = [0, 32], sizes = [8, 32], strides = [1, 1]} : vector<8x128xf32> to vector<8x32xf32>
    %310 = arith.mulf %309, %279 : vector<8x32xf32>
    %311 = vector.extract_strided_slice %308 {offsets = [0, 0], sizes = [8, 32], strides = [1, 1]} : vector<8x128xf32> to vector<8x32xf32>
    %312 = vector.extract_strided_slice %308 {offsets = [0, 64], sizes = [8, 32], strides = [1, 1]} : vector<8x128xf32> to vector<8x32xf32>
    %313 = arith.mulf %311, %312 : vector<8x32xf32>
    %314 = arith.addf %310, %313 : vector<8x32xf32>
    %315 = vector.extract_strided_slice %308 {offsets = [0, 96], sizes = [8, 32], strides = [1, 1]} : vector<8x128xf32> to vector<8x32xf32>
    %316 = math.tanh %314 : vector<8x32xf32>
    %317 = arith.mulf %315, %316 : vector<8x32xf32>
    %318 = vector.shape_cast %317 : vector<8x32xf32> to vector<4x2x32xf32>
    %319 = tpu.transpose %318, [1, 0, 2] : vector<4x2x32xf32> -> vector<2x4x32xf32>
    %320 = vector.shape_cast %319 : vector<2x4x32xf32> to vector<2x128xf32>
    %c0_48 = arith.constant 0 : index
    %c0_49 = arith.constant 0 : index
    %321 = vector.load %arg2[%c0_48, %c0_49] : memref<136x256xf32, #tpu.memory_space<vmem>>, vector<128x256xf32>
    %c128 = arith.constant 128 : index
    %c0_50 = arith.constant 0 : index
    %322 = vector.load %arg2[%c128, %c0_50] : memref<136x256xf32, #tpu.memory_space<vmem>>, vector<1x256xf32>
    %cst_51 = arith.constant dense<0.000000e+00> : vector<2x256xf32>
    %323 = tpu.matmul %320, %321, %cst_51 {dimension_numbers = #tpu.dot_dimension_numbers<[1], [0], [0], [1], [0, 0, 1, 1], [], []>} : vector<2x128xf32>, vector<128x256xf32>, vector<2x256xf32> -> vector<2x256xf32>
    %324 = vector.broadcast %322 : vector<1x256xf32> to vector<2x256xf32>
    %325 = arith.addf %323, %324 : vector<2x256xf32>
    %cst_52 = arith.constant 0.000000e+00 : f32
    %326 = vector.broadcast %cst_52 : f32 to vector<2x256xf32>
    %327 = arith.maximumf %325, %326 : vector<2x256xf32>
    %c136 = arith.constant 136 : index
    %c0_53 = arith.constant 0 : index
    %328 = vector.load %arg1[%c136, %c0_53] : memref<392x128xf32, #tpu.memory_space<vmem>>, vector<256x128xf32>
    %c34 = arith.constant 34 : index
    %c0_54 = arith.constant 0 : index
    %329 = vector.load %arg1[%c34, %c0_54] : memref<392x128xf32, #tpu.memory_space<vmem>>, vector<1x128xf32>
    %cst_55 = arith.constant dense<0.000000e+00> : vector<2x128xf32>
    %330 = tpu.matmul %327, %328, %cst_55 {dimension_numbers = #tpu.dot_dimension_numbers<[1], [0], [0], [1], [0, 0, 1, 1], [], []>} : vector<2x256xf32>, vector<256x128xf32>, vector<2x128xf32> -> vector<2x128xf32>
    %331 = vector.broadcast %329 : vector<1x128xf32> to vector<2x128xf32>
    %332 = arith.addf %330, %331 : vector<2x128xf32>
    %cst_56 = arith.constant 0.000000e+00 : f32
    %333 = vector.broadcast %cst_56 : f32 to vector<2x128xf32>
    %334 = arith.maximumf %332, %333 : vector<2x128xf32>
    %c36 = arith.constant 36 : index
    %c0_57 = arith.constant 0 : index
    %335 = vector.load %arg1[%c36, %c0_57] : memref<392x128xf32, #tpu.memory_space<vmem>>, vector<1x128xf32>
    %c35 = arith.constant 35 : index
    %c0_58 = arith.constant 0 : index
    %336 = vector.load %arg1[%c35, %c0_58] : memref<392x128xf32, #tpu.memory_space<vmem>>, vector<1x4xf32>
    %337 = vector.broadcast %335 : vector<1x128xf32> to vector<2x128xf32>
    %338 = arith.mulf %334, %337 : vector<2x128xf32>
    %339 = vector.shape_cast %338 : vector<2x128xf32> to vector<2x4x32xf32>
    %cst_59 = arith.constant dense<0.000000e+00> : vector<2x4xf32>
    %340 = vector.multi_reduction <add>, %339, %cst_59 [2] : vector<2x4x32xf32> to vector<2x4xf32>
    %341 = vector.broadcast %336 : vector<1x4xf32> to vector<2x4xf32>
    %342 = arith.addf %340, %341 : vector<2x4xf32>
    %c0_60 = arith.constant 0 : index
    %c0_61 = arith.constant 0 : index
    %343 = vector.load %arg3[%c0_60, %c0_61] : memref<2x4xf32, #tpu.memory_space<vmem>>, vector<2x4xf32>
    tpu.vector_store %arg3[%c0_60, %c0_61], %342 {strides = array<i32>} : memref<2x4xf32, #tpu.memory_space<vmem>>, vector<2x4xf32>,
    return
  }
}

</mosaic_0001>

<bundles_post_ra>
// kernel: tpu_custom_call.1
= control target key start
LH: loop header
LB: loop body
LE: loop exit
PB: predicated region body
PF: predicated region fallthrough
CT: control target
= control target key end

     0   :  { %8 = vsyncpa [#allocation3], 0  ;;  %s4457_s0 = inlined_call_operand.vmem [shape: f32[2,8,4], index: 0, kind: input, shape index: {}]   ;;  %s4458_s1 = inlined_call_operand.hbm [shape: f32[392,128], index: 1, kind: input, shape index: {}]   ;;  %s4459_s2 = inlined_call_operand.hbm [shape: f32[136,256], index: 2, kind: input, shape index: {}]   ;;  %s4460_s3 = inlined_call_operand.hbm [shape: f32[2,4], index: 3, kind: output, shape index: {}]  }
   0x1   :  { %9 = vsyncpa [#allocation6], 0 }
   0x2   :  { %10 = vsyncpa [#allocation4], 0  ;;  %s3919_s12 = smov [#allocation2]   ;;  %s3847_s16 = scalar_lea.hbm %s4458_s1, 6272 }
   0x3   :  { %s18_s13 = sshll.u32 %s3919_s12, 4  ;;  %p3848_p0 = scmp.ne.s32.totalorder %s4458_s1, %s3847_s16  ;;  %s19_s13 = int_to_ptr.vmem [resolvable:$true] %s18_s13 }
   0x4   :  { %p3851_p1 = scmp.lt.u32.totalorder %s3847_s16, %s4458_s1 }
   0x6   :  { %p3853_p2 = pnand %p3851_p1, %p3848_p0 }
   0x8   :  { %3856 = shalt.err (!%p3853_p2)
}
   0x9   :  { %s3857_s21 = scalar_lea.vmem %s19_s13, 6272  ;;  %p3862_p4 = scmp.lt.s32.totalorder %s19_s13, %s19_s13 }
   0xa   :  { %p3858_p3 = scmp.ne.s32.totalorder %s19_s13, %s3857_s21  ;;  %p3863_p5 = scmp.lt.s32.totalorder %s3857_s21, %s3857_s21 }
   0xc   :  { %p3864_p6 = por %p3863_p5, %p3862_p4 }
   0xe   :  { %p3865_p7 = pnand %p3864_p6, %p3858_p3 }
  0x10   :  { %3868 = shalt.err (!%p3865_p7)
}
  0x11   :  { %s3920_s22 = smov 128   ;;  %s3921_s23 = smov 8  }
  0x12   :  { %24 = dma.hbm_to_vmem [thread:$0]  %s4458_s1, 6272, %s19_s13, [#allocation3], %s3920_s22, %s3920_s22, %s3921_s23  }
  0x13   :  { %s3922_s26 = smov [#allocation5]   ;;  %s3869_s30 = scalar_lea.hbm %s4459_s2, 4352 }
  0x14   :  { %s30_s27 = sshll.u32 %s3922_s26, 4  ;;  %p3870_p8 = scmp.ne.s32.totalorder %s4459_s2, %s3869_s30  ;;  %s31_s27 = int_to_ptr.vmem [resolvable:$true] %s30_s27 }
  0x15   :  { %p3873_p9 = scmp.lt.u32.totalorder %s3869_s30, %s4459_s2 }
  0x17   :  { %p3875_p10 = pnand %p3873_p9, %p3870_p8 }
  0x19   :  { %3878 = shalt.err (!%p3875_p10)
}
  0x1a   :  { %s3879_s8 = scalar_lea.vmem %s31_s27, 4352  ;;  %p3884_p12 = scmp.lt.s32.totalorder %s31_s27, %s31_s27 }
  0x1b   :  { %p3880_p11 = scmp.ne.s32.totalorder %s31_s27, %s3879_s8  ;;  %p3885_p13 = scmp.lt.s32.totalorder %s3879_s8, %s3879_s8 }
  0x1d   :  { %p3886_p0 = por %p3885_p13, %p3884_p12 }
  0x1f   :  { %p3887_p1 = pnand %p3886_p0, %p3880_p11 }
  0x21   :  { %3890 = shalt.err (!%p3887_p1)
}
  0x22   :  { %s3923_s1 = smov 256   ;;  %s3924_s9 = smov 16  }
  0x23   :  { %36 = dma.hbm_to_vmem [thread:$0]  %s4459_s2, 4352, %s31_s27, [#allocation6], %s3923_s1, %s3923_s1, %s3924_s9  }
  0x24   :  { %3913 = dma.done.wait [#allocation3], 6272  }
  0x25   :  { %3914 = vsyncadd [#allocation3], 4294961024 }
  0x26   :  { %3915 = dma.done.wait [#allocation6], 4352  }
  0x27   :  { %3916 = vsyncadd [#allocation6], 4294962944  ;;  %vm45_vm0 = vcmask 31744   ;;  %vm50_vm1 = vcmask 64512   ;;  %v49_v0 = vld [vmem:[#allocation2] sm:$0xff]  ;;  %v132_v1 = vld [vmem:[#allocation2 + $0x8] sm:$0xff]  ;;  %v377_v18 = vlaneseq }
  0x28   :  { %v43_v2 = vld [vmem:[%s4457_s0] sm:$0xff]  ;;  %3272 = vmatprep.subr.mxu0 %v49_v0  ;;  %3277 = vmatprep.subr.mxu1 %v132_v1  ;;  %v44_v4 = vld [vmem:[%s4457_s0 + $0x8] sm:$0xff]  ;;  %v515_v8 = vld [vmem:[#allocation2 + $0x28] sm:$0xff]  ;;  %v3925_v13 = vmov 0.0|0.0   ;;  %vm3926_vm2 = vmmov 0   ;;  %v3927_v14 = vmov 0.0  }
  0x29   :  { %v46_v3 = vsel %vm45_vm0, %v43_v2, 0.0  ;;  %3273 = vmatpush3.msra.mxu0 %v49_v0  ;;  %v47_v5 = vsel %vm45_vm0, %v44_v4, 0.0  ;;  %v208_v6 = vld [vmem:[#allocation2 + $0x10] sm:$0xff]  ;;  %v284_v7 = vld [vmem:[#allocation2 + $0x18] sm:$0xff]  ;;  %3278 = vmatpush3.msra.mxu1 %v132_v1  ;;  %v518_v12 = vld [vmem:[#allocation2 + $0x40] sm:$0xff]  ;;  %v4011_v22 = vshrl.u32 %v377_v18, 7 }
  0x2a   :  { %3274 = vmatprep.mubr.msk.f32.mxu0 %vm50_vm1, %v46_v3  ;;  %3279 = vmatprep.mubr.msk.f32.mxu1 %vm50_vm1, %v46_v3  ;;  %v516_v9 = vld [vmem:[#allocation2 + $0x30] sm:$0xff]  ;;  %v517_v11 = vld [vmem:[#allocation2 + $0x38] sm:$0xff]  ;;  %v3928_v16 = vmov 1983009808   ;;  %v3929_v19 = vmov 1934713408  }
  0x2b   :  { %3275 = vmatmul.mubr.msk.f32.vlgmr.msra.gmra.mrb[0].mxu0 %vm50_vm1, %v47_v5  ;;  %3280 = vmatmul.mubr.msk.f32.vlgmr.msra.gmra.mrb[0].mxu1 %vm50_vm1, %v47_v5  ;;  %v3990_v10 = vpack.c.bf16 %v516_v9, %v515_v8  ;;  %v4000_v15 = vpack.c.bf16 %v518_v12, %v517_v11  ;;  %v375_v17 = vunpack.c.l.s4 %v3928_v16  ;;  %v439_v20 = vunpack.c.l.s4 %v3929_v19  ;;  %v3078_v23 = vld [vmem:[#allocation2 + $0x20] ss:$0 sm:$0xff]  ;;  %s3931_s0 = smov 64   ;;  %s3932_s2 = smov 32  }
  0x2c   :  { %3282 = vmatprep.subr.mxu0 %v208_v6  ;;  %3287 = vmatprep.subr.mxu1 %v284_v7  ;;  %v4016_v36 = vand.u32 127, %v377_v18  ;;  %vm528_vm6 = vcmask 261120   ;;  %s3933_s16 = smov 96   ;;  %vm2743_vm7 = vcmask 523264   ;;  %vm2745_vm8 = vcmask 785408   ;;  %s3935_s17 = smov [#allocation7]  }
  0x2d   :  { %3283 = vmatpush3.msra.mxu0 %v208_v6  ;;  %3288 = vmatpush3.msra.mxu1 %v284_v7  ;;  %v376_v21 = vunpack.c.0.s8 %v375_v17  ;;  %v440_v26 = vunpack.c.0.s8 %v439_v20  ;;  %v3930_v17 = vmov 0.5   ;;  %vm3015_vm9 = vcmask 257024   ;;  %s3060_s18 = sshll.u32 %s3935_s17, 4  ;;  %s3061_s18 = int_to_ptr.vmem [resolvable:$true] %s3060_s18 }
  0x2e   :  { %3284 = vmatprep.mubr.msk.f32.mxu0 %vm50_vm1, %v46_v3  ;;  %3289 = vmatprep.mubr.msk.f32.mxu1 %vm50_vm1, %v46_v3  ;;  %vm510_vm3 = vcmp.ge.s32.totalorder %v4016_v36, 64  ;;  %vm511_vm4 = vcmp.lt.s32.totalorder %v4016_v36, 96  ;;  %vm3049_vm10 = vcmask 1041409   ;;  %vm3052_vm11 = vcmask 25600   ;;  %s3891_s19 = scalar_lea.vmem %s3061_s18, 32  ;;  %p3896_p3 = scmp.lt.s32.totalorder %s3061_s18, %s3061_s18 }
  0x2f   :  { %3285 = vmatmul.mubr.msk.f32.vlgmr.msra.gmra.mrb[2].mxu0 %vm50_vm1, %v47_v5  ;;  %3290 = vmatmul.mubr.msk.f32.vlgmr.msra.gmra.mrb[2].mxu1 %vm50_vm1, %v47_v5  ;;  %v4014_v29 = vsub.s32 %v376_v21, %v4011_v22  ;;  %v4019_v41 = vsub.s32 %v440_v26, %v4011_v22  ;;  %vm4031_vm5 = vmand %vm510_vm3, %vm511_vm4  ;;  %p3892_p2 = scmp.ne.s32.totalorder %s3061_s18, %s3891_s19  ;;  %p3897_p4 = scmp.lt.s32.totalorder %s3891_s19, %s3891_s19 }
  0x30   :  { %3556 = vmatprep.subr.bf16.mxu0 %v3925_v13  ;;  %3300 = vmatprep.mubr.msk.f32.mxu0 %vm3926_vm2, %v3927_v14  ;;  %v4055_v18 = vsel %vm4031_vm5, 1.0, %v3930_v17 }
  0x31   :  { %3558 = vmatpush3.bf16.msra.mxu0 %v3990_v10  ;;  %3562 = vmatprep.subr.bf16.mxu1 %v3925_v13  ;;  %p3898_p5 = por %p3897_p4, %p3896_p3 }
  0x32   :  { %3559 = vmatprep.subr.bf16.mxu0 %v3925_v13  ;;  %3311 = vmatprep.mubr.msk.f32.mxu1 %vm3926_vm2, %v3927_v14 }
  0x33   :  { %p3899_p6 = pnand %p3898_p5, %p3892_p2 }
  0x35   :  { %3561 = vmatpush3.bf16.msra.mxu0 %v4000_v15 }
  0x36   :  { %3568 = vmatprep.subr.bf16.mxu0 %v3925_v13 }
  0x38   :  { %3301 = vmatmul.mubr.f32.vlgmr.msra.gmra.mrb[4].mxu0 %v3927_v14 }
  0x39   :  { %3322 = vmatprep.mubr.msk.f32.mxu0 %vm3926_vm2, %v3927_v14 }
  0xfe   :  { %v3276_v24 = vpop.f32.mrb[0].mxu0  ;;  %v3281_v25 = vpop.f32.mrb[0].mxu1 }
  0xff   :  { %v365_v27 = vadd.f32 %v3276_v24, %v3078_v23  ;;  %v367_v28 = vadd.f32 %v3281_v25, %v3078_v23  ;;  %v123_v30 = vpop.f32.mrb[1].mxu0  ;;  %v199_v31 = vpop.f32.mrb[1].mxu1 }
 0x100   :  { %v364_v32 = vadd.f32 %v3078_v23, %v123_v30  ;;  %v366_v33 = vadd.f32 %v3078_v23, %v199_v31 }
 0x101   :  { %v388_v34 = vcombine.low %v365_v27, %v367_v28  ;;  %v389_v35 = vcombine.high %v365_v27, %v367_v28 }
 0x102   :  { %v372_v37 = vcombine.low %v364_v32, %v366_v33  ;;  %v373_v38 = vcombine.high %v364_v32, %v366_v33  ;;  %v3286_v39 = vpop.f32.mrb[2].mxu0  ;;  %v3291_v40 = vpop.f32.mrb[2].mxu1 }
 0x103   :  { %v396_v42 = vrot.slane %v388_v34, %v4014_v29  ;;  %v403_v43 = vrot.slane %v389_v35, %v4014_v29  ;;  %v369_v44 = vadd.f32 %v3286_v39, %v3078_v23  ;;  %v371_v45 = vadd.f32 %v3291_v40, %v3078_v23  ;;  %v275_v46 = vpop.f32.mrb[3].mxu0  ;;  %v351_v47 = vpop.f32.mrb[3].mxu1 }
 0x104   :  { %v380_v48 = vrot.slane %v372_v37, %v4014_v29  ;;  %v387_v49 = vrot.slane %v373_v38, %v4014_v29  ;;  %v368_v50 = vadd.f32 %v3078_v23, %v275_v46  ;;  %v370_v51 = vadd.f32 %v3078_v23, %v351_v47  ;;  %v525_v46 = vld [vmem:[#allocation2 + $0x78] sm:$0xff] }
 0x105   :  { %v420_v52 = vcombine.low %v369_v44, %v371_v45  ;;  %v421_v53 = vcombine.high %v369_v44, %v371_v45  ;;  %v4082_v34 = vsel %vm4031_vm5, 0.0, %v3930_v17  ;;  %v523_v44 = vld [vmem:[#allocation2 + $0x68] sm:$0xff]  ;;  %v524_v45 = vld [vmem:[#allocation2 + $0x70] sm:$0xff] }
 0x106   :  { %v404_v54 = vcombine.low %v368_v50, %v370_v51  ;;  %v405_v55 = vcombine.high %v368_v50, %v370_v51  ;;  %v436_v56 = vcombine.low %v380_v48, %v396_v42  ;;  %v437_v57 = vcombine.high %v380_v48, %v396_v42  ;;  %v526_v48 = vld [vmem:[#allocation2 + $0x80] sm:$0xff]  ;;  %v520_v50 = vld [vmem:[#allocation2 + $0x50] sm:$0xff] }
 0x107   :  { %v428_v58 = vrot.slane %v420_v52, %v4014_v29  ;;  %v435_v59 = vrot.slane %v421_v53, %v4014_v29  ;;  %v452_v60 = vcombine.low %v387_v49, %v403_v43  ;;  %v453_v61 = vcombine.high %v387_v49, %v403_v43  ;;  %v519_v49 = vld [vmem:[#allocation2 + $0x48] sm:$0xff]  ;;  %v521_v52 = vld [vmem:[#allocation2 + $0x58] sm:$0xff]  ;;  %v522_v53 = vld [vmem:[#allocation2 + $0x60] sm:$0xff] }
 0x108   :  { %v412_v62 = vrot.slane %v404_v54, %v4014_v29  ;;  %v419_v63 = vrot.slane %v405_v55, %v4014_v29  ;;  %v4036_v5 = vrot.slane %v436_v56, %v4019_v41  ;;  %v4039_v7 = vrot.slane %v437_v57, %v4019_v41 }
 0x109   :  { %v4058_v19 = vrot.slane %v452_v60, %v4019_v41  ;;  %v4061_v20 = vrot.slane %v453_v61, %v4019_v41  ;;  %v4091_v47 = vpack.c.bf16 %v524_v45, %v523_v44  ;;  %v4093_v51 = vpack.c.bf16 %v520_v50, %v519_v49 }
 0x10a   :  { %v468_v0 = vcombine.low %v412_v62, %v428_v58  ;;  %v469_v2 = vcombine.high %v412_v62, %v428_v58  ;;  %v484_v3 = vcombine.low %v419_v63, %v435_v59  ;;  %v485_v4 = vcombine.high %v419_v63, %v435_v59  ;;  %v4130_v62 = vld [vmem:[#allocation2 + $0x21] ss:$0 sm:$0xff] }
 0x10b   :  { %v598_v6 = vpop.f32.mrb[4].mxu0  ;;  %3564 = vmatpush3.bf16.msra.mxu1 %v4091_v47  ;;  %v4096_v54 = vpack.c.bf16 %v526_v48, %v525_v46  ;;  %3570 = vmatpush3.bf16.msra.mxu0 %v4093_v51  ;;  %v4100_v55 = vpack.c.bf16 %v522_v53, %v521_v52 }
 0x10c   :  { %v4042_v8 = vrot.slane %v468_v0, %v4019_v41  ;;  %v3302_v9 = vpop.f32.mrb[5].mxu0  ;;  %v4045_v11 = vrot.slane %v469_v2, %v4019_v41  ;;  %v4048_v12 = vrot.slane %v484_v3, %v4019_v41  ;;  %v4051_v16 = vrot.slane %v485_v4, %v4019_v41  ;;  %3565 = vmatprep.subr.bf16.mxu1 %v3925_v13 }
 0x10d   :  { %3571 = vmatprep.subr.bf16.mxu0 %v3925_v13 }
 0x10e   :  { %v500_v21 = vcombine.low %v4036_v5, %v4042_v8  ;;  %v501_v23 = vcombine.high %v4036_v5, %v4042_v8  ;;  %v502_v24 = vcombine.low %v4039_v7, %v4045_v11  ;;  %v503_v25 = vcombine.high %v4039_v7, %v4045_v11 }
 0x10f   :  { %v504_v26 = vcombine.low %v4058_v19, %v4048_v12  ;;  %v505_v27 = vcombine.high %v4058_v19, %v4048_v12  ;;  %v506_v28 = vcombine.low %v4061_v20, %v4051_v16  ;;  %v507_v30 = vcombine.high %v4061_v20, %v4051_v16  ;;  %3567 = vmatpush3.bf16.msra.mxu1 %v4096_v54 }
 0x110   :  { %v602_v31 = vadd.f32 %v598_v6, %v500_v21  ;;  %3574 = vmatprep.subr.bf16.mxu1 %v3925_v13  ;;  %3573 = vmatpush3.bf16.msra.mxu0 %v4100_v55 }
 0x111   :  { %3580 = vmatprep.subr.bf16.mxu0 %v3925_v13 }
 0x112   :  { %v603_v32 = vmul.f32 %v602_v31, %v4055_v18  ;;  %3312 = vmatmul.mubr.f32.vlgmr.msra.gmra.mrb[4].mxu1 %v3927_v14 }
 0x113   :  { %3576 = vmatpush3.bf16.msra.mxu1 %v3990_v10  ;;  %3333 = vmatprep.mubr.msk.f32.mxu1 %vm3926_vm2, %v3927_v14 }
 0x114   :  { %3783 = vtanh.f32 %v603_v32  ;;  %3577 = vmatprep.subr.bf16.mxu1 %v3925_v13 }
 0x117   :  { %3579 = vmatpush3.bf16.msra.mxu1 %v4000_v15 }
 0x118   :  { %3586 = vmatprep.subr.bf16.mxu1 %v3925_v13 }
 0x11e   :  { %v3784_v33 = vpop.eup %3783 }
 0x11f   :  { %v605_v35 = vmul.f32 %v3784_v33, %v4055_v18 }
 0x121   :  { %v606_v37 = vadd.f32 %v605_v35, %v4082_v34 }
 0x123   :  { %609 = vrot.lane.b32.xlu0 %v606_v37, %s3931_s0  ;;  %v607_v40 = vmul.f32 0.0, %v606_v37 }
 0x195   :  { %v610_v38 = vpop.permute.xlu0 %609 }
 0x196   :  { %v612_v39 = vmul.f32 %v610_v38, %v606_v37 }
 0x198   :  { %614 = vrot.lane.b32.xlu0 %v612_v39, %s3932_s2 }
 0x1e5   :  { %v690_v59 = vpop.f32.mrb[4].mxu1 }
 0x1e6   :  { %v3313_v60 = vpop.f32.mrb[5].mxu1 }
 0x20a   :  { %v615_v42 = vpop.permute.xlu0 %614 }
 0x20b   :  { %v4088_v43 = vadd.f32 %v615_v42, %v607_v40 }
 0x20d   :  { %3785 = vtanh.f32 %v4088_v43 }
 0x217   :  { %v3786_v56 = vpop.eup %3785 }
 0x218   :  { %620 = vrot.lane.b32.xlu1 %v3786_v56, %s3931_s0 }
 0x28a   :  { %v621_v57 = vpop.permute.xlu1 %620 }
 0x28b   :  { %v623_v58 = vmul.f32 %v621_v57, %v606_v37 }
 0x28d   :  { %695 = vrot.lane.b32.xlu1 %v623_v58, %s3932_s2 }
 0x2ff   :  { %v696_v61 = vpop.permute.xlu1 %695 }
 0x300   :  { %3323 = vmatmul.mubr.msk.f32.vlgmr.msra.gmra.mrb[6].mxu0 %vm528_vm6, %v696_v61  ;;  %3334 = vmatmul.mubr.msk.f32.vlgmr.msra.gmra.mrb[6].mxu1 %vm528_vm6, %v696_v61 }
 0x301   :  { %3588 = vmatpush3.bf16.msra.mxu1 %v4093_v51  ;;  %3582 = vmatpush3.bf16.msra.mxu0 %v4091_v47 }
 0x302   :  { %3589 = vmatprep.subr.bf16.mxu1 %v3925_v13  ;;  %3583 = vmatprep.subr.bf16.mxu0 %v3925_v13 }
 0x303   :  { %3355 = vmatprep.mubr.msk.f32.mxu1 %vm3926_vm2, %v3927_v14  ;;  %3344 = vmatprep.mubr.msk.f32.mxu0 %vm3926_vm2, %v3927_v14 }
 0x305   :  { %3591 = vmatpush3.bf16.msra.mxu1 %v4100_v55  ;;  %3585 = vmatpush3.bf16.msra.mxu0 %v4096_v54 }
 0x306   :  { %3592 = vmatprep.subr.bf16.mxu0 %v3925_v13  ;;  %3598 = vmatprep.subr.bf16.mxu1 %v3925_v13 }
 0x3d3   :  { %v765_v63 = vpop.f32.mrb[6].mxu0  ;;  %v861_v0 = vpop.f32.mrb[6].mxu1 }
 0x3d4   :  { %v766_v1 = vadd.f32 %v765_v63, %v690_v59  ;;  %v865_v2 = vadd.f32 %v861_v0, %v501_v23  ;;  %v3324_v3 = vpop.f32.mrb[7].mxu0  ;;  %v3335_v4 = vpop.f32.mrb[7].mxu1 }
 0x3d6   :  { %v773_v6 = vadd.f32 %v4130_v62, %v766_v1  ;;  %v866_v9 = vmul.f32 %v865_v2, %v4055_v18 }
 0x3d8   :  { %v774_v17 = vmul.f32 %v773_v6, %v4055_v18  ;;  %3787 = vtanh.f32 %v866_v9 }
 0x3da   :  { %3789 = vtanh.f32 %v774_v17 }
 0x3e2   :  { %v3788_v21 = vpop.eup %3787 }
 0x3e3   :  { %v868_v31 = vmul.f32 %v3788_v21, %v4055_v18 }
 0x3e4   :  { %v3790_v32 = vpop.eup %3789 }
 0x3e5   :  { %v869_v33 = vadd.f32 %v868_v31, %v4082_v34  ;;  %v776_v35 = vmul.f32 %v3790_v32, %v4055_v18 }
 0x3e7   :  { %872 = vrot.lane.b32.xlu1 %v869_v33, %s3931_s0  ;;  %v777_v5 = vadd.f32 %v776_v35, %v4082_v34  ;;  %v870_v39 = vmul.f32 %v869_v33, %v4088_v43 }
 0x3e9   :  { %780 = vrot.lane.b32.xlu0 %v777_v5, %s3931_s0  ;;  %v778_v44 = vmul.f32 0.0, %v777_v5 }
 0x459   :  { %v873_v8 = vpop.permute.xlu1 %872 }
 0x45a   :  { %v875_v23 = vmul.f32 %v873_v8, %v869_v33 }
 0x45b   :  { %v781_v37 = vpop.permute.xlu0 %780 }
 0x45c   :  { %v783_v38 = vmul.f32 %v781_v37, %v777_v5  ;;  %877 = vrot.lane.b32.xlu1 %v875_v23, %s3932_s2 }
 0x45e   :  { %785 = vrot.lane.b32.xlu0 %v783_v38, %s3932_s2 }
 0x4ce   :  { %v878_v40 = vpop.permute.xlu1 %877 }
 0x4cf   :  { %v4147_v42 = vadd.f32 %v878_v40, %v870_v39 }
 0x4d0   :  { %v786_v45 = vpop.permute.xlu0 %785 }
 0x4d1   :  { %3791 = vtanh.f32 %v4147_v42  ;;  %v788_v46 = vadd.f32 %v786_v45, %v778_v44 }
 0x4d3   :  { %3793 = vtanh.f32 %v788_v46 }
 0x4db   :  { %v3792_v48 = vpop.eup %3791 }
 0x4dc   :  { %883 = vrot.lane.b32.xlu1 %v3792_v48, %s3931_s0 }
 0x4dd   :  { %v3794_v49 = vpop.eup %3793 }
 0x4de   :  { %791 = vrot.lane.b32.xlu0 %v3794_v49, %s3931_s0 }
 0x54e   :  { %v884_v50 = vpop.permute.xlu1 %883 }
 0x54f   :  { %v886_v52 = vmul.f32 %v884_v50, %v869_v33 }
 0x550   :  { %v792_v53 = vpop.permute.xlu0 %791 }
 0x551   :  { %v794_v56 = vmul.f32 %v792_v53, %v777_v5  ;;  %963 = vrot.lane.b32.xlu1 %v886_v52, %s3932_s2 }
 0x553   :  { %888 = vrot.lane.b32.xlu0 %v794_v56, %s3932_s2 }
 0x5c3   :  { %v964_v43 = vpop.permute.xlu1 %963 }
 0x5c4   :  { %3356 = vmatmul.mubr.msk.f32.vlgmr.msra.gmra.mrb[8].mxu1 %vm528_vm6, %v964_v43 }
 0x5c5   :  { %v889_v57 = vpop.permute.xlu0 %888  ;;  %3600 = vmatpush3.bf16.msra.mxu1 %v4091_v47  ;;  %3377 = vmatprep.mubr.msk.f32.mxu1 %vm3926_vm2, %v3927_v14 }
 0x5c6   :  { %3345 = vmatmul.mubr.msk.f32.vlgmr.msra.gmra.mrb[8].mxu0 %vm528_vm6, %v889_v57  ;;  %3601 = vmatprep.subr.bf16.mxu1 %v3925_v13 }
 0x5c7   :  { %3594 = vmatpush3.bf16.msra.mxu0 %v3990_v10  ;;  %3366 = vmatprep.mubr.msk.f32.mxu0 %vm3926_vm2, %v3927_v14 }
 0x5c8   :  { %3595 = vmatprep.subr.bf16.mxu0 %v3925_v13 }
 0x5c9   :  { %3603 = vmatpush3.bf16.msra.mxu1 %v4096_v54 }
 0x5ca   :  { %3610 = vmatprep.subr.bf16.mxu1 %v3925_v13 }
 0x5cb   :  { %3597 = vmatpush3.bf16.msra.mxu0 %v4000_v15 }
 0x5cc   :  { %3604 = vmatprep.subr.bf16.mxu0 %v3925_v13 }
 0x5ce   :  { %3367 = vmatmul.mubr.msk.f32.vlgmr.msra.gmra.mrb[10].mxu0 %vm528_vm6, %v964_v43 }
 0x5cf   :  { %3606 = vmatpush3.bf16.msra.mxu0 %v4093_v51  ;;  %3388 = vmatprep.mubr.msk.f32.mxu0 %vm3926_vm2, %v3927_v14 }
 0x5d0   :  { %3607 = vmatprep.subr.bf16.mxu0 %v3925_v13 }
 0x5d3   :  { %3609 = vmatpush3.bf16.msra.mxu0 %v4100_v55 }
 0x5d4   :  { %3616 = vmatprep.subr.bf16.mxu0 %v3925_v13 }
 0x697   :  { %v1033_v58 = vpop.f32.mrb[8].mxu1 }
 0x698   :  { %v3357_v59 = vpop.f32.mrb[9].mxu1 }
 0x699   :  { %v958_v60 = vpop.f32.mrb[8].mxu0 }
 0x69a   :  { %v1034_v61 = vadd.f32 %v1033_v58, %v958_v60  ;;  %v3346_v63 = vpop.f32.mrb[9].mxu0 }
 0x69c   :  { %v1037_v0 = vadd.f32 %v4130_v62, %v1034_v61 }
 0x69e   :  { %v1038_v1 = vmul.f32 %v1037_v0, %v4055_v18 }
 0x6a0   :  { %3795 = vtanh.f32 %v1038_v1 }
 0x6a1   :  { %v1125_v2 = vpop.f32.mrb[10].mxu0 }
 0x6a2   :  { %v1129_v3 = vadd.f32 %v1125_v2, %v502_v24  ;;  %v3368_v4 = vpop.f32.mrb[11].mxu0 }
 0x6a4   :  { %v1130_v6 = vmul.f32 %v1129_v3, %v4055_v18 }
 0x6a6   :  { %3797 = vtanh.f32 %v1130_v6 }
 0x6aa   :  { %v3796_v9 = vpop.eup %3795 }
 0x6ab   :  { %v1040_v17 = vmul.f32 %v3796_v9, %v4055_v18 }
 0x6ad   :  { %v1041_v21 = vadd.f32 %v1040_v17, %v4082_v34 }
 0x6af   :  { %1044 = vrot.lane.b32.xlu0 %v1041_v21, %s3931_s0  ;;  %v1042_v23 = vmul.f32 %v1041_v21, %v788_v46 }
 0x6b0   :  { %v3798_v31 = vpop.eup %3797 }
 0x6b1   :  { %v1132_v32 = vmul.f32 %v3798_v31, %v4055_v18 }
 0x6b3   :  { %v1133_v33 = vadd.f32 %v1132_v32, %v4082_v34 }
 0x6b5   :  { %1136 = vrot.lane.b32.xlu1 %v1133_v33, %s3931_s0  ;;  %v1134_v39 = vmul.f32 %v1133_v33, %v4147_v42 }
 0x721   :  { %v1045_v35 = vpop.permute.xlu0 %1044 }
 0x722   :  { %v1047_v24 = vmul.f32 %v1045_v35, %v1041_v21 }
 0x724   :  { %1049 = vrot.lane.b32.xlu0 %v1047_v24, %s3932_s2 }
 0x727   :  { %v1137_v5 = vpop.permute.xlu1 %1136 }
 0x728   :  { %v1139_v8 = vmul.f32 %v1137_v5, %v1133_v33 }
 0x72a   :  { %1141 = vrot.lane.b32.xlu1 %v1139_v8, %s3932_s2 }
 0x796   :  { %v1050_v37 = vpop.permute.xlu0 %1049 }
 0x797   :  { %v4189_v38 = vadd.f32 %v1050_v37, %v1042_v23 }
 0x799   :  { %3799 = vtanh.f32 %v4189_v38 }
 0x79c   :  { %v1142_v40 = vpop.permute.xlu1 %1141 }
 0x79d   :  { %v1144_v44 = vadd.f32 %v1142_v40, %v1134_v39 }
 0x79f   :  { %3801 = vtanh.f32 %v1144_v44 }
 0x7a3   :  { %v3800_v45 = vpop.eup %3799 }
 0x7a4   :  { %1055 = vrot.lane.b32.xlu0 %v3800_v45, %s3931_s0 }
 0x7a9   :  { %v3802_v48 = vpop.eup %3801 }
 0x7aa   :  { %1147 = vrot.lane.b32.xlu1 %v3802_v48, %s3931_s0 }
 0x816   :  { %v1056_v49 = vpop.permute.xlu0 %1055 }
 0x817   :  { %v1058_v50 = vmul.f32 %v1056_v49, %v1041_v21 }
 0x819   :  { %1152 = vrot.lane.b32.xlu0 %v1058_v50, %s3932_s2 }
 0x81c   :  { %v1148_v46 = vpop.permute.xlu1 %1147 }
 0x81d   :  { %v1150_v52 = vmul.f32 %v1148_v46, %v1133_v33 }
 0x81f   :  { %1227 = vrot.lane.b32.xlu1 %v1150_v52, %s3932_s2 }
 0x88b   :  { %v1153_v53 = vpop.permute.xlu0 %1152 }
 0x88c   :  { %3378 = vmatmul.mubr.msk.f32.vlgmr.msra.gmra.mrb[10].mxu1 %vm528_vm6, %v1153_v53 }
 0x88d   :  { %3612 = vmatpush3.bf16.msra.mxu1 %v3990_v10  ;;  %3399 = vmatprep.mubr.msk.f32.mxu1 %vm3926_vm2, %v3927_v14 }
 0x88e   :  { %3613 = vmatprep.subr.bf16.mxu1 %v3925_v13 }
 0x891   :  { %3615 = vmatpush3.bf16.msra.mxu1 %v4000_v15  ;;  %v1228_v42 = vpop.permute.xlu1 %1227 }
 0x892   :  { %3389 = vmatmul.mubr.msk.f32.vlgmr.msra.gmra.mrb[12].mxu0 %vm528_vm6, %v1228_v42  ;;  %3622 = vmatprep.subr.bf16.mxu1 %v3925_v13 }
 0x893   :  { %3618 = vmatpush3.bf16.msra.mxu0 %v4091_v47  ;;  %3410 = vmatprep.mubr.msk.f32.mxu0 %vm3926_vm2, %v3927_v14 }
 0x894   :  { %3400 = vmatmul.mubr.msk.f32.vlgmr.msra.gmra.mrb[12].mxu1 %vm528_vm6, %v1228_v42  ;;  %3619 = vmatprep.subr.bf16.mxu0 %v3925_v13 }
 0x895   :  { %3624 = vmatpush3.bf16.msra.mxu1 %v4093_v51  ;;  %3421 = vmatprep.mubr.msk.f32.mxu1 %vm3926_vm2, %v3927_v14 }
 0x896   :  { %3625 = vmatprep.subr.bf16.mxu1 %v3925_v13 }
 0x897   :  { %3621 = vmatpush3.bf16.msra.mxu0 %v4096_v54 }
 0x898   :  { %3628 = vmatprep.subr.bf16.mxu0 %v3925_v13 }
 0x899   :  { %3627 = vmatpush3.bf16.msra.mxu1 %v4100_v55 }
 0x89a   :  { %3634 = vmatprep.subr.bf16.mxu1 %v3925_v13 }
 0x95f   :  { %v1222_v56 = vpop.f32.mrb[10].mxu1 }
 0x960   :  { %v3379_v43 = vpop.f32.mrb[11].mxu1 }
 0x965   :  { %v1297_v57 = vpop.f32.mrb[12].mxu0 }
 0x966   :  { %v1298_v58 = vadd.f32 %v1297_v57, %v1222_v56  ;;  %v3390_v59 = vpop.f32.mrb[13].mxu0 }
 0x967   :  { %v1389_v60 = vpop.f32.mrb[12].mxu1 }
 0x968   :  { %v1301_v61 = vadd.f32 %v4130_v62, %v1298_v58  ;;  %v1393_v63 = vadd.f32 %v1389_v60, %v503_v25  ;;  %v3401_v0 = vpop.f32.mrb[13].mxu1 }
 0x96a   :  { %v1302_v1 = vmul.f32 %v1301_v61, %v4055_v18  ;;  %v1394_v2 = vmul.f32 %v1393_v63, %v4055_v18 }
 0x96c   :  { %3803 = vtanh.f32 %v1302_v1 }
 0x96d   :  { %3805 = vtanh.f32 %v1394_v2 }
 0x976   :  { %v3804_v3 = vpop.eup %3803 }
 0x977   :  { %v3806_v4 = vpop.eup %3805  ;;  %v1304_v6 = vmul.f32 %v3804_v3, %v4055_v18 }
 0x978   :  { %v1396_v9 = vmul.f32 %v3806_v4, %v4055_v18 }
 0x979   :  { %v1305_v17 = vadd.f32 %v1304_v6, %v4082_v34 }
 0x97a   :  { %v1397_v21 = vadd.f32 %v1396_v9, %v4082_v34 }
 0x97b   :  { %1308 = vrot.lane.b32.xlu0 %v1305_v17, %s3931_s0  ;;  %v1306_v32 = vmul.f32 %v1305_v17, %v4189_v38 }
 0x97c   :  { %1400 = vrot.lane.b32.xlu1 %v1397_v21, %s3931_s0  ;;  %v1398_v33 = vmul.f32 %v1397_v21, %v1144_v44 }
 0x9ed   :  { %v1309_v7 = vpop.permute.xlu0 %1308 }
 0x9ee   :  { %v1401_v11 = vpop.permute.xlu1 %1400  ;;  %v1311_v25 = vmul.f32 %v1309_v7, %v1305_v17 }
 0x9ef   :  { %v1403_v31 = vmul.f32 %v1401_v11, %v1397_v21 }
 0x9f0   :  { %1313 = vrot.lane.b32.xlu0 %v1311_v25, %s3932_s2 }
 0x9f1   :  { %1405 = vrot.lane.b32.xlu1 %v1403_v31, %s3932_s2 }
 0xa62   :  { %v1314_v35 = vpop.permute.xlu0 %1313 }
 0xa63   :  { %v1406_v24 = vpop.permute.xlu1 %1405  ;;  %v1316_v5 = vadd.f32 %v1314_v35, %v1306_v32 }
 0xa64   :  { %v4233_v8 = vadd.f32 %v1406_v24, %v1398_v33 }
 0xa65   :  { %3807 = vtanh.f32 %v1316_v5 }
 0xa66   :  { %3809 = vtanh.f32 %v4233_v8 }
 0xa6f   :  { %v3808_v23 = vpop.eup %3807 }
 0xa70   :  { %v3810_v37 = vpop.eup %3809  ;;  %1319 = vrot.lane.b32.xlu0 %v3808_v23, %s3931_s0 }
 0xa71   :  { %1411 = vrot.lane.b32.xlu1 %v3810_v37, %s3931_s0 }
 0xae2   :  { %v1320_v39 = vpop.permute.xlu0 %1319 }
 0xae3   :  { %v1412_v40 = vpop.permute.xlu1 %1411  ;;  %v1322_v45 = vmul.f32 %v1320_v39, %v1305_v17 }
 0xae4   :  { %v1414_v48 = vmul.f32 %v1412_v40, %v1397_v21 }
 0xae5   :  { %1416 = vrot.lane.b32.xlu0 %v1322_v45, %s3932_s2 }
 0xae6   :  { %1491 = vrot.lane.b32.xlu1 %v1414_v48, %s3932_s2 }
 0xb57   :  { %v1417_v38 = vpop.permute.xlu0 %1416 }
 0xb58   :  { %v1492_v44 = vpop.permute.xlu1 %1491  ;;  %3411 = vmatmul.mubr.msk.f32.vlgmr.msra.gmra.mrb[14].mxu0 %vm528_vm6, %v1417_v38 }
 0xb59   :  { %3422 = vmatmul.mubr.msk.f32.vlgmr.msra.gmra.mrb[14].mxu1 %vm528_vm6, %v1492_v44  ;;  %3630 = vmatpush3.bf16.msra.mxu0 %v3990_v10 }
 0xb5a   :  { %3631 = vmatprep.subr.bf16.mxu0 %v3925_v13  ;;  %3432 = vmatprep.mubr.msk.f32.mxu0 %vm3926_vm2, %v3927_v14 }
 0xb5b   :  { %3636 = vmatpush3.bf16.msra.mxu1 %v4091_v47  ;;  %3443 = vmatprep.mubr.msk.f32.mxu1 %vm3926_vm2, %v3927_v14 }
 0xb5c   :  { %3637 = vmatprep.subr.bf16.mxu1 %v3925_v13 }
 0xb5d   :  { %3633 = vmatpush3.bf16.msra.mxu0 %v4000_v15 }
 0xb5e   :  { %3640 = vmatprep.subr.bf16.mxu0 %v3925_v13 }
 0xb5f   :  { %3639 = vmatpush3.bf16.msra.mxu1 %v4096_v54 }
 0xb60   :  { %3433 = vmatmul.mubr.msk.f32.vlgmr.msra.gmra.mrb[16].mxu0 %vm528_vm6, %v1492_v44  ;;  %3646 = vmatprep.subr.bf16.mxu1 %v3925_v13 }
 0xb61   :  { %3642 = vmatpush3.bf16.msra.mxu0 %v4093_v51  ;;  %3454 = vmatprep.mubr.msk.f32.mxu0 %vm3926_vm2, %v3927_v14 }
 0xb62   :  { %3643 = vmatprep.subr.bf16.mxu0 %v3925_v13 }
 0xb65   :  { %3645 = vmatpush3.bf16.msra.mxu0 %v4100_v55 }
 0xb66   :  { %3652 = vmatprep.subr.bf16.mxu0 %v3925_v13 }
 0xc2b   :  { %v1486_v49 = vpop.f32.mrb[14].mxu0 }
 0xc2c   :  { %v1561_v50 = vpop.f32.mrb[14].mxu1  ;;  %v3412_v46 = vpop.f32.mrb[15].mxu0 }
 0xc2d   :  { %v1562_v52 = vadd.f32 %v1561_v50, %v1486_v49  ;;  %v3423_v53 = vpop.f32.mrb[15].mxu1 }
 0xc2f   :  { %v1565_v42 = vadd.f32 %v4130_v62, %v1562_v52 }
 0xc31   :  { %v1566_v56 = vmul.f32 %v1565_v42, %v4055_v18 }
 0xc33   :  { %3811 = vtanh.f32 %v1566_v56  ;;  %v1653_v43 = vpop.f32.mrb[16].mxu0 }
 0xc34   :  { %v1657_v57 = vadd.f32 %v1653_v43, %v504_v26  ;;  %v3434_v58 = vpop.f32.mrb[17].mxu0 }
 0xc36   :  { %v1658_v59 = vmul.f32 %v1657_v57, %v4055_v18 }
 0xc38   :  { %3813 = vtanh.f32 %v1658_v59 }
 0xc3d   :  { %v3812_v60 = vpop.eup %3811 }
 0xc3e   :  { %v1568_v61 = vmul.f32 %v3812_v60, %v4055_v18 }
 0xc40   :  { %v1569_v63 = vadd.f32 %v1568_v61, %v4082_v34 }
 0xc42   :  { %v3814_v0 = vpop.eup %3813  ;;  %1572 = vrot.lane.b32.xlu0 %v1569_v63, %s3931_s0  ;;  %v1570_v9 = vmul.f32 %v1569_v63, %v1316_v5 }
 0xc43   :  { %v1660_v1 = vmul.f32 %v3814_v0, %v4055_v18 }
 0xc45   :  { %v1661_v2 = vadd.f32 %v1660_v1, %v4082_v34 }
 0xc47   :  { %1664 = vrot.lane.b32.xlu1 %v1661_v2, %s3931_s0  ;;  %v1662_v7 = vmul.f32 %v1661_v2, %v4233_v8 }
 0xcb4   :  { %v1573_v3 = vpop.permute.xlu0 %1572 }
 0xcb5   :  { %v1575_v26 = vmul.f32 %v1573_v3, %v1569_v63 }
 0xcb7   :  { %1577 = vrot.lane.b32.xlu0 %v1575_v26, %s3932_s2 }
 0xcb9   :  { %v1665_v4 = vpop.permute.xlu1 %1664 }
 0xcba   :  { %v1667_v6 = vmul.f32 %v1665_v4, %v1661_v2 }
 0xcbc   :  { %1669 = vrot.lane.b32.xlu1 %v1667_v6, %s3932_s2 }
 0xd29   :  { %v1578_v17 = vpop.permute.xlu0 %1577 }
 0xd2a   :  { %v4275_v21 = vadd.f32 %v1578_v17, %v1570_v9 }
 0xd2c   :  { %3815 = vtanh.f32 %v4275_v21 }
 0xd2e   :  { %v1670_v11 = vpop.permute.xlu1 %1669 }
 0xd2f   :  { %v1672_v25 = vadd.f32 %v1670_v11, %v1662_v7 }
 0xd31   :  { %3817 = vtanh.f32 %v1672_v25 }
 0xd36   :  { %v3816_v31 = vpop.eup %3815 }
 0xd37   :  { %1583 = vrot.lane.b32.xlu0 %v3816_v31, %s3931_s0 }
 0xd3b   :  { %v3818_v32 = vpop.eup %3817 }
 0xd3c   :  { %1675 = vrot.lane.b32.xlu1 %v3818_v32, %s3931_s0 }
 0xda9   :  { %v1584_v33 = vpop.permute.xlu0 %1583 }
 0xdaa   :  { %v1586_v35 = vmul.f32 %v1584_v33, %v1569_v63 }
 0xdac   :  { %1680 = vrot.lane.b32.xlu0 %v1586_v35, %s3932_s2 }
 0xdae   :  { %v1676_v24 = vpop.permute.xlu1 %1675 }
 0xdaf   :  { %v1678_v5 = vmul.f32 %v1676_v24, %v1661_v2 }
 0xdb1   :  { %1755 = vrot.lane.b32.xlu1 %v1678_v5, %s3932_s2 }
 0xe1e   :  { %v1681_v23 = vpop.permute.xlu0 %1680 }
 0xe1f   :  { %3444 = vmatmul.mubr.msk.f32.vlgmr.msra.gmra.mrb[16].mxu1 %vm528_vm6, %v1681_v23 }
 0xe20   :  { %3648 = vmatpush3.bf16.msra.mxu1 %v3990_v10  ;;  %3465 = vmatprep.mubr.msk.f32.mxu1 %vm3926_vm2, %v3927_v14 }
 0xe21   :  { %3649 = vmatprep.subr.bf16.mxu1 %v3925_v13 }
 0xe23   :  { %v1756_v8 = vpop.permute.xlu1 %1755 }
 0xe24   :  { %3651 = vmatpush3.bf16.msra.mxu1 %v4000_v15  ;;  %3455 = vmatmul.mubr.msk.f32.vlgmr.msra.gmra.mrb[18].mxu0 %vm528_vm6, %v1756_v8 }
 0xe25   :  { %3654 = vmatpush3.bf16.msra.mxu0 %v4091_v47  ;;  %3658 = vmatprep.subr.bf16.mxu1 %v3925_v13 }
 0xe26   :  { %3655 = vmatprep.subr.bf16.mxu0 %v3925_v13  ;;  %3476 = vmatprep.mubr.msk.f32.mxu0 %vm3926_vm2, %v3927_v14 }
 0xe27   :  { %3466 = vmatmul.mubr.msk.f32.vlgmr.msra.gmra.mrb[18].mxu1 %vm528_vm6, %v1756_v8 }
 0xe28   :  { %3660 = vmatpush3.bf16.msra.mxu1 %v4093_v51  ;;  %3487 = vmatprep.mubr.msk.f32.mxu1 %vm3926_vm2, %v3927_v14 }
 0xe29   :  { %3657 = vmatpush3.bf16.msra.mxu0 %v4096_v54  ;;  %3661 = vmatprep.subr.bf16.mxu1 %v3925_v13 }
 0xe2a   :  { %3664 = vmatprep.subr.bf16.mxu0 %v3925_v13 }
 0xe2c   :  { %3663 = vmatpush3.bf16.msra.mxu1 %v4100_v55 }
 0xe2d   :  { %3670 = vmatprep.subr.bf16.mxu1 %v3925_v13 }
 0xef2   :  { %v1750_v37 = vpop.f32.mrb[16].mxu1 }
 0xef3   :  { %v3445_v39 = vpop.f32.mrb[17].mxu1 }
 0xef7   :  { %v1825_v40 = vpop.f32.mrb[18].mxu0 }
 0xef8   :  { %v1826_v45 = vadd.f32 %v1825_v40, %v1750_v37  ;;  %v3456_v48 = vpop.f32.mrb[19].mxu0 }
 0xefa   :  { %v1829_v38 = vadd.f32 %v4130_v62, %v1826_v45  ;;  %v1917_v44 = vpop.f32.mrb[18].mxu1 }
 0xefb   :  { %v1921_v49 = vadd.f32 %v1917_v44, %v505_v27  ;;  %v3467_v50 = vpop.f32.mrb[19].mxu1 }
 0xefc   :  { %v1830_v46 = vmul.f32 %v1829_v38, %v4055_v18 }
 0xefd   :  { %v1922_v52 = vmul.f32 %v1921_v49, %v4055_v18 }
 0xefe   :  { %3819 = vtanh.f32 %v1830_v46 }
 0xeff   :  { %3821 = vtanh.f32 %v1922_v52 }
 0xf08   :  { %v3820_v53 = vpop.eup %3819 }
 0xf09   :  { %v3822_v42 = vpop.eup %3821  ;;  %v1832_v56 = vmul.f32 %v3820_v53, %v4055_v18 }
 0xf0a   :  { %v1924_v43 = vmul.f32 %v3822_v42, %v4055_v18 }
 0xf0b   :  { %v1833_v57 = vadd.f32 %v1832_v56, %v4082_v34 }
 0xf0c   :  { %v1925_v58 = vadd.f32 %v1924_v43, %v4082_v34 }
 0xf0d   :  { %1836 = vrot.lane.b32.xlu0 %v1833_v57, %s3931_s0  ;;  %v1834_v60 = vmul.f32 %v1833_v57, %v4275_v21 }
 0xf0e   :  { %1928 = vrot.lane.b32.xlu1 %v1925_v58, %s3931_s0  ;;  %v1926_v61 = vmul.f32 %v1925_v58, %v1672_v25 }
 0xf7f   :  { %v1837_v12 = vpop.permute.xlu0 %1836 }
 0xf80   :  { %v1929_v19 = vpop.permute.xlu1 %1928  ;;  %v1839_v27 = vmul.f32 %v1837_v12, %v1833_v57 }
 0xf81   :  { %v1931_v59 = vmul.f32 %v1929_v19, %v1925_v58 }
 0xf82   :  { %1841 = vrot.lane.b32.xlu0 %v1839_v27, %s3932_s2 }
 0xf83   :  { %1933 = vrot.lane.b32.xlu1 %v1931_v59, %s3932_s2 }
 0xff4   :  { %v1842_v63 = vpop.permute.xlu0 %1841 }
 0xff5   :  { %v1934_v0 = vpop.permute.xlu1 %1933  ;;  %v1844_v1 = vadd.f32 %v1842_v63, %v1834_v60 }
 0xff6   :  { %v4319_v2 = vadd.f32 %v1934_v0, %v1926_v61 }
 0xff7   :  { %3823 = vtanh.f32 %v1844_v1 }
 0xff8   :  { %3825 = vtanh.f32 %v4319_v2 }
0x1001   :  { %v3824_v3 = vpop.eup %3823 }
0x1002   :  { %v3826_v26 = vpop.eup %3825  ;;  %1847 = vrot.lane.b32.xlu0 %v3824_v3, %s3931_s0 }
0x1003   :  { %1939 = vrot.lane.b32.xlu1 %v3826_v26, %s3931_s0 }
0x1074   :  { %v1848_v4 = vpop.permute.xlu0 %1847 }
0x1075   :  { %v1940_v6 = vpop.permute.xlu1 %1939  ;;  %v1850_v9 = vmul.f32 %v1848_v4, %v1833_v57 }
0x1076   :  { %v1942_v17 = vmul.f32 %v1940_v6, %v1925_v58 }
0x1077   :  { %1944 = vrot.lane.b32.xlu0 %v1850_v9, %s3932_s2 }
0x1078   :  { %2019 = vrot.lane.b32.xlu1 %v1942_v17, %s3932_s2 }
0x10e9   :  { %v1945_v21 = vpop.permute.xlu0 %1944 }
0x10ea   :  { %v2020_v7 = vpop.permute.xlu1 %2019  ;;  %3477 = vmatmul.mubr.msk.f32.vlgmr.msra.gmra.mrb[20].mxu0 %vm528_vm6, %v1945_v21 }
0x10eb   :  { %3488 = vmatmul.mubr.msk.f32.vlgmr.msra.gmra.mrb[20].mxu1 %vm528_vm6, %v2020_v7  ;;  %3666 = vmatpush3.bf16.msra.mxu0 %v3990_v10 }
0x10ec   :  { %3667 = vmatprep.subr.bf16.mxu0 %v3925_v13  ;;  %3498 = vmatprep.mubr.msk.f32.mxu0 %vm3926_vm2, %v3927_v14 }
0x10ed   :  { %3672 = vmatpush3.bf16.msra.mxu1 %v4091_v47  ;;  %3509 = vmatprep.mubr.msk.f32.mxu1 %vm3926_vm2, %v3927_v14 }
0x10ee   :  { %3673 = vmatprep.subr.bf16.mxu1 %v3925_v13 }
0x10ef   :  { %3669 = vmatpush3.bf16.msra.mxu0 %v4000_v15 }
0x10f0   :  { %3676 = vmatprep.subr.bf16.mxu0 %v3925_v13 }
0x10f1   :  { %3675 = vmatpush3.bf16.msra.mxu1 %v4096_v54 }
0x10f2   :  { %3499 = vmatmul.mubr.msk.f32.vlgmr.msra.gmra.mrb[22].mxu0 %vm528_vm6, %v2020_v7  ;;  %3682 = vmatprep.subr.bf16.mxu1 %v3925_v13 }
0x10f3   :  { %3678 = vmatpush3.bf16.msra.mxu0 %v4093_v51  ;;  %3520 = vmatprep.mubr.msk.f32.mxu0 %vm3926_vm2, %v3927_v14 }
0x10f4   :  { %3679 = vmatprep.subr.bf16.mxu0 %v3925_v13 }
0x10f7   :  { %3681 = vmatpush3.bf16.msra.mxu0 %v4100_v55 }
0x10f8   :  { %3688 = vmatprep.subr.bf16.mxu0 %v3925_v13 }
0x11bd   :  { %v2014_v11 = vpop.f32.mrb[20].mxu0 }
0x11be   :  { %v2089_v25 = vpop.f32.mrb[20].mxu1  ;;  %v3478_v31 = vpop.f32.mrb[21].mxu0 }
0x11bf   :  { %v2090_v32 = vadd.f32 %v2089_v25, %v2014_v11  ;;  %v3489_v33 = vpop.f32.mrb[21].mxu1 }
0x11c1   :  { %v2093_v35 = vadd.f32 %v4130_v62, %v2090_v32 }
0x11c3   :  { %v2094_v24 = vmul.f32 %v2093_v35, %v4055_v18 }
0x11c5   :  { %3827 = vtanh.f32 %v2094_v24  ;;  %v2181_v5 = vpop.f32.mrb[22].mxu0 }
0x11c6   :  { %v2185_v23 = vadd.f32 %v2181_v5, %v506_v28  ;;  %v3500_v8 = vpop.f32.mrb[23].mxu0 }
0x11c8   :  { %v2186_v37 = vmul.f32 %v2185_v23, %v4055_v18 }
0x11ca   :  { %3829 = vtanh.f32 %v2186_v37 }
0x11cf   :  { %v3828_v39 = vpop.eup %3827 }
0x11d0   :  { %v2096_v40 = vmul.f32 %v3828_v39, %v4055_v18 }
0x11d2   :  { %v2097_v45 = vadd.f32 %v2096_v40, %v4082_v34 }
0x11d4   :  { %v3830_v48 = vpop.eup %3829  ;;  %2100 = vrot.lane.b32.xlu0 %v2097_v45, %s3931_s0  ;;  %v2098_v52 = vmul.f32 %v2097_v45, %v1844_v1 }
0x11d5   :  { %v2188_v38 = vmul.f32 %v3830_v48, %v4055_v18 }
0x11d7   :  { %v2189_v44 = vadd.f32 %v2188_v38, %v4082_v34 }
0x11d9   :  { %2192 = vrot.lane.b32.xlu1 %v2189_v44, %s3931_s0  ;;  %v2190_v56 = vmul.f32 %v2189_v44, %v4319_v2 }
0x1246   :  { %v2101_v49 = vpop.permute.xlu0 %2100 }
0x1247   :  { %v2103_v28 = vmul.f32 %v2101_v49, %v2097_v45 }
0x1249   :  { %2105 = vrot.lane.b32.xlu0 %v2103_v28, %s3932_s2 }
0x124b   :  { %v2193_v50 = vpop.permute.xlu1 %2192 }
0x124c   :  { %v2195_v46 = vmul.f32 %v2193_v50, %v2189_v44 }
0x124e   :  { %2197 = vrot.lane.b32.xlu1 %v2195_v46, %s3932_s2 }
0x12bb   :  { %v2106_v53 = vpop.permute.xlu0 %2105 }
0x12bc   :  { %v2108_v42 = vadd.f32 %v2106_v53, %v2098_v52 }
0x12be   :  { %3831 = vtanh.f32 %v2108_v42 }
0x12c0   :  { %v2198_v43 = vpop.permute.xlu1 %2197 }
0x12c1   :  { %v2200_v57 = vadd.f32 %v2198_v43, %v2190_v56 }
0x12c3   :  { %3833 = vtanh.f32 %v2200_v57 }
0x12c8   :  { %v3832_v58 = vpop.eup %3831 }
0x12c9   :  { %2111 = vrot.lane.b32.xlu0 %v3832_v58, %s3931_s0 }
0x12cd   :  { %v3834_v12 = vpop.eup %3833 }
0x12ce   :  { %2203 = vrot.lane.b32.xlu1 %v3834_v12, %s3931_s0 }
0x133b   :  { %v2112_v19 = vpop.permute.xlu0 %2111 }
0x133c   :  { %v2114_v27 = vmul.f32 %v2112_v19, %v2097_v45 }
0x133e   :  { %2208 = vrot.lane.b32.xlu0 %v2114_v27, %s3932_s2 }
0x1340   :  { %v2204_v59 = vpop.permute.xlu1 %2203 }
0x1341   :  { %v2206_v60 = vmul.f32 %v2204_v59, %v2189_v44 }
0x1343   :  { %2283 = vrot.lane.b32.xlu1 %v2206_v60, %s3932_s2 }
0x13b0   :  { %v2209_v61 = vpop.permute.xlu0 %2208 }
0x13b1   :  { %3510 = vmatmul.mubr.msk.f32.vlgmr.msra.gmra.mrb[22].mxu1 %vm528_vm6, %v2209_v61 }
0x13b2   :  { %3684 = vmatpush3.bf16.msra.mxu1 %v3990_v10  ;;  %3531 = vmatprep.mubr.msk.f32.mxu1 %vm3926_vm2, %v3927_v14 }
0x13b3   :  { %3685 = vmatprep.subr.bf16.mxu1 %v3925_v13 }
0x13b5   :  { %v2284_v63 = vpop.permute.xlu1 %2283 }
0x13b6   :  { %3687 = vmatpush3.bf16.msra.mxu1 %v4000_v15  ;;  %3521 = vmatmul.mubr.msk.f32.vlgmr.msra.gmra.mrb[24].mxu0 %vm528_vm6, %v2284_v63 }
0x13b7   :  { %3694 = vmatprep.subr.bf16.mxu1 %v3925_v13  ;;  %3690 = vmatpush3.bf16.msra.mxu0 %v4091_v47 }
0x13b8   :  { %3691 = vmatprep.subr.bf16.mxu0 %v3925_v13  ;;  %3542 = vmatprep.mubr.msk.f32.mxu0 %vm3926_vm2, %v3927_v14 }
0x13b9   :  { %3532 = vmatmul.mubr.msk.f32.vlgmr.msra.gmra.mrb[24].mxu1 %vm528_vm6, %v2284_v63  ;;  %v2748_v63 = vld [vmem:[#allocation5 + $0x8] sm:$0xff] }
0x13ba   :  { %3696 = vmatpush3.bf16.msra.mxu1 %v4093_v51  ;;  %3553 = vmatprep.mubr.msk.f32.mxu1 %vm3926_vm2, %v3927_v14 }
0x13bb   :  { %3697 = vmatprep.subr.bf16.mxu1 %v3925_v13  ;;  %3693 = vmatpush3.bf16.msra.mxu0 %v4096_v54 }
0x13be   :  { %3699 = vmatpush3.bf16.msra.mxu1 %v4100_v55 }
0x1484   :  { %v2278_v10 = vpop.f32.mrb[22].mxu1 }
0x1485   :  { %v3511_v15 = vpop.f32.mrb[23].mxu1 }
0x1486   :  { %v2747_v15 = vld [vmem:[#allocation5] sm:$0xff] }
0x1489   :  { %v2353_v47 = vpop.f32.mrb[24].mxu0 }
0x148a   :  { %v2354_v0 = vadd.f32 %v2353_v47, %v2278_v10  ;;  %v3522_v1 = vpop.f32.mrb[25].mxu0  ;;  %v2750_v10 = vld [vmem:[#allocation5 + $0x18] sm:$0xff] }
0x148b   :  { %v3700_v47 = vpack.c.bf16 %v2750_v10, %v2748_v63  ;;  %v2752_v1 = vld [vmem:[#allocation5 + $0x28] sm:$0xff]  ;;  %v2865_v10 = vld [vmem:[#allocation2 + $0x88] sm:$0xff] }
0x148c   :  { %v2357_v2 = vadd.f32 %v4130_v62, %v2354_v0  ;;  %v2445_v3 = vpop.f32.mrb[24].mxu1  ;;  %v2749_v0 = vld [vmem:[#allocation5 + $0x10] sm:$0xff]  ;;  %v2882_v63 = vld [vmem:[#allocation2 + $0x110] sm:$0xff] }
0x148d   :  { %v2449_v51 = vadd.f32 %v2445_v3, %v507_v30  ;;  %v3533_v26 = vpop.f32.mrb[25].mxu1  ;;  %v3702_v3 = vpack.c.bf16 %v2749_v0, %v2747_v15  ;;  %3701 = vmatprep.subr.bf16.mxu0 %v3700_v47  ;;  %v2866_v47 = vld [vmem:[#allocation2 + $0x90] sm:$0xff]  ;;  %v2883_v0 = vld [vmem:[#allocation2 + $0x118] sm:$0xff] }
0x148e   :  { %v2358_v4 = vmul.f32 %v2357_v2, %v4055_v18  ;;  %v2754_v2 = vld [vmem:[#allocation5 + $0x38] sm:$0xff]  ;;  %v2751_v26 = vld [vmem:[#allocation5 + $0x20] sm:$0xff] }
0x148f   :  { %v2450_v13 = vmul.f32 %v2449_v51, %v4055_v18  ;;  %v3704_v51 = vpack.c.bf16 %v2754_v2, %v2752_v1  ;;  %v2884_v1 = vld [vmem:[#allocation2 + $0x120] sm:$0xff] }
0x1490   :  { %3835 = vtanh.f32 %v2358_v4  ;;  %v2753_v4 = vld [vmem:[#allocation5 + $0x30] sm:$0xff] }
0x1491   :  { %3837 = vtanh.f32 %v2450_v13  ;;  %v2756_v13 = vld [vmem:[#allocation5 + $0x48] sm:$0xff] }
0x149a   :  { %v3836_v54 = vpop.eup %3835 }
0x149b   :  { %v3838_v55 = vpop.eup %3837  ;;  %v2360_v6 = vmul.f32 %v3836_v54, %v4055_v18  ;;  %v2758_v54 = vld [vmem:[#allocation5 + $0x58] sm:$0xff] }
0x149c   :  { %v2452_v9 = vmul.f32 %v3838_v55, %v4055_v18  ;;  %v3706_v55 = vpack.c.bf16 %v2753_v4, %v2751_v26  ;;  %v3736_v26 = vpack.c.bf16 %v2884_v1, %v2883_v0  ;;  %v2867_v4 = vld [vmem:[#allocation2 + $0x98] sm:$0xff]  ;;  %v2780_v0 = vld [vmem:[#allocation5 + $0x100] ss:$8 sm:$0x3]  ;;  %v2788_v1 = vsub.s32 1, %v4011_v22 }
0x149d   :  { %v2361_v17 = vadd.f32 %v2360_v6, %v4082_v34  ;;  %v3708_v6 = vpack.c.bf16 %v2758_v54, %v2756_v13  ;;  %v2868_v13 = vld [vmem:[#allocation2 + $0xa0] sm:$0xff]  ;;  %v2885_v54 = vld [vmem:[#allocation2 + $0x128] sm:$0xff] }
0x149e   :  { %v2453_v21 = vadd.f32 %v2452_v9, %v4082_v34  ;;  %v2755_v9 = vld [vmem:[#allocation5 + $0x40] sm:$0xff] }
0x149f   :  { %2364 = vrot.lane.b32.xlu0 %v2361_v17, %s3931_s0  ;;  %v2362_v11 = vmul.f32 %v2361_v17, %v2108_v42 }
0x14a0   :  { %2456 = vrot.lane.b32.xlu1 %v2453_v21, %s3931_s0  ;;  %v2454_v25 = vmul.f32 %v2453_v21, %v2200_v57 }
0x1511   :  { %v2365_v16 = vpop.permute.xlu0 %2364 }
0x1512   :  { %v2457_v20 = vpop.permute.xlu1 %2456  ;;  %v2367_v30 = vmul.f32 %v2365_v16, %v2361_v17  ;;  %v2762_v16 = vld [vmem:[#allocation5 + $0x78] sm:$0xff] }
0x1513   :  { %v2459_v7 = vmul.f32 %v2457_v20, %v2453_v21 }
0x1514   :  { %2369 = vrot.lane.b32.xlu0 %v2367_v30, %s3932_s2 }
0x1515   :  { %2461 = vrot.lane.b32.xlu1 %v2459_v7, %s3932_s2  ;;  %v2759_v7 = vld [vmem:[#allocation5 + $0x60] sm:$0xff] }
0x1586   :  { %v2370_v31 = vpop.permute.xlu0 %2369 }
0x1587   :  { %v2462_v32 = vpop.permute.xlu1 %2461  ;;  %v2372_v33 = vadd.f32 %v2370_v31, %v2362_v11  ;;  %v2761_v11 = vld [vmem:[#allocation5 + $0x70] sm:$0xff]  ;;  %v2766_v31 = vld [vmem:[#allocation5 + $0x98] sm:$0xff] }
0x1588   :  { %v2464_v35 = vadd.f32 %v2462_v32, %v2454_v25  ;;  %v2764_v25 = vld [vmem:[#allocation5 + $0x88] sm:$0xff]  ;;  %v3714_v32 = vpack.c.bf16 %v2761_v11, %v2759_v7  ;;  %v2887_v11 = vld [vmem:[#allocation2 + $0x138] sm:$0xff] }
0x1589   :  { %3839 = vtanh.f32 %v2372_v33 }
0x158a   :  { %3841 = vtanh.f32 %v2464_v35  ;;  %v2763_v35 = vld [vmem:[#allocation5 + $0x80] sm:$0xff] }
0x1593   :  { %v3840_v24 = vpop.eup %3839 }
0x1594   :  { %v3842_v5 = vpop.eup %3841  ;;  %2375 = vrot.lane.b32.xlu0 %v3840_v24, %s3931_s0  ;;  %v2765_v24 = vld [vmem:[#allocation5 + $0x90] sm:$0xff] }
0x1595   :  { %2467 = vrot.lane.b32.xlu1 %v3842_v5, %s3931_s0  ;;  %v2768_v5 = vld [vmem:[#allocation5 + $0xa8] sm:$0xff] }
0x1606   :  { %v2376_v23 = vpop.permute.xlu0 %2375 }
0x1607   :  { %v2468_v8 = vpop.permute.xlu1 %2467  ;;  %v2378_v37 = vmul.f32 %v2376_v23, %v2361_v17  ;;  %v2757_v17 = vld [vmem:[#allocation5 + $0x50] sm:$0xff]  ;;  %v2770_v23 = vld [vmem:[#allocation5 + $0xb8] sm:$0xff] }
0x1608   :  { %v2470_v39 = vmul.f32 %v2468_v8, %v2453_v21  ;;  %v2760_v21 = vld [vmem:[#allocation5 + $0x68] sm:$0xff]  ;;  %v3710_v20 = vpack.c.bf16 %v2757_v17, %v2755_v9  ;;  %v3718_v8 = vpack.c.bf16 %v2765_v24, %v2763_v35  ;;  %v3738_v17 = vpack.c.bf16 %v2868_v13, %v2867_v4  ;;  %v2871_v24 = vld [vmem:[#allocation2 + $0xb8] sm:$0xff] }
0x1609   :  { %2472 = vrot.lane.b32.xlu0 %v2378_v37, %s3932_s2  ;;  %v3712_v30 = vpack.c.bf16 %v2762_v16, %v2760_v21  ;;  %v3720_v37 = vpack.c.bf16 %v2770_v23, %v2768_v5  ;;  %v2869_v16 = vld [vmem:[#allocation2 + $0xa8] sm:$0xff]  ;;  %v2872_v5 = vld [vmem:[#allocation2 + $0xc0] sm:$0xff] }
0x160a   :  { %2547 = vrot.lane.b32.xlu1 %v2470_v39, %s3932_s2  ;;  %v2767_v39 = vld [vmem:[#allocation5 + $0xa0] sm:$0xff] }
0x167b   :  { %v2473_v40 = vpop.permute.xlu0 %2472 }
0x167c   :  { %v2548_v45 = vpop.permute.xlu1 %2547  ;;  %3543 = vmatmul.mubr.msk.f32.vlgmr.msra.gmra.mrb[26].mxu0 %vm528_vm6, %v2473_v40  ;;  %v2769_v40 = vld [vmem:[#allocation5 + $0xb0] sm:$0xff] }
0x167d   :  { %3554 = vmatmul.mubr.msk.f32.vlgmr.msra.gmra.mrb[26].mxu1 %vm528_vm6, %v2548_v45  ;;  %2856 = vmatprep.mubr.f32.mxu0 %v3927_v14  ;;  %v2772_v45 = vld [vmem:[#allocation5 + $0xc8] sm:$0xff] }
0x167e   :  { %3703 = vmatpush1.bf16.msra.mxu0 %v3702_v3 }
0x167f   :  { %3705 = vmatprep.subr.bf16.mxu0 %v3704_v51  ;;  %v3734_v51 = vpack.c.bf16 %v2866_v47, %v2865_v10  ;;  %v2880_v10 = vld [vmem:[#allocation2 + $0x100] sm:$0xff]  ;;  %v2784_v47 = vsub.s32 0, %v4011_v22 }
0x1682   :  { %3707 = vmatpush1.bf16.msra.mxu0 %v3706_v55  ;;  %v2886_v55 = vld [vmem:[#allocation2 + $0x130] sm:$0xff] }
0x1683   :  { %3709 = vmatprep.subr.bf16.mxu0 %v3708_v6  ;;  %v3740_v21 = vpack.c.bf16 %v2886_v55, %v2885_v54 }
0x1686   :  { %3711 = vmatpush1.bf16.msra.mxu0 %v3710_v20  ;;  %v2870_v20 = vld [vmem:[#allocation2 + $0xb0] sm:$0xff] }
0x1687   :  { %3713 = vmatprep.subr.bf16.mxu0 %v3712_v30 }
0x168a   :  { %3715 = vmatpush1.bf16.msra.mxu0 %v3714_v32 }
0x174f   :  { %v2542_v48 = vpop.f32.mrb[26].mxu0 }
0x1750   :  { %v2617_v38 = vpop.f32.mrb[26].mxu1  ;;  %v3544_v44 = vpop.f32.mrb[27].mxu0 }
0x1751   :  { %v2618_v49 = vadd.f32 %v2617_v38, %v2542_v48  ;;  %v3555_v28 = vpop.f32.mrb[27].mxu1  ;;  %v2774_v48 = vld [vmem:[#allocation5 + $0xd8] sm:$0xff]  ;;  %v3722_v38 = vpack.c.bf16 %v2769_v40, %v2767_v39  ;;  %v3746_v39 = vpack.c.bf16 %v2872_v5, %v2871_v24 }
0x1752   :  { %v3724_v44 = vpack.c.bf16 %v2774_v48, %v2772_v45  ;;  %v2773_v28 = vld [vmem:[#allocation5 + $0xd0] sm:$0xff]  ;;  %v2873_v45 = vld [vmem:[#allocation2 + $0xc8] sm:$0xff]  ;;  %v2874_v48 = vld [vmem:[#allocation2 + $0xd0] sm:$0xff] }
0x1753   :  { %v2621_v50 = vadd.f32 %v4130_v62, %v2618_v49  ;;  %v2771_v49 = vld [vmem:[#allocation5 + $0xc0] sm:$0xff] }
0x1755   :  { %v2622_v46 = vmul.f32 %v2621_v50, %v4055_v18  ;;  %v3726_v50 = vpack.c.bf16 %v2773_v28, %v2771_v49  ;;  %v3750_v49 = vpack.c.bf16 %v2874_v48, %v2873_v45  ;;  %v3934_v45 = vmov 0  }
0x1756   :  { %3781 = vset.pattern.permute.xlu1 %v3934_v45  ;;  %3782 = vset.pattern.permute.xlu0 %v3934_v45 }
0x1757   :  { %3843 = vtanh.f32 %v2622_v46 }
0x1761   :  { %v3844_v52 = vpop.eup %3843 }
0x1762   :  { %v2624_v53 = vmul.f32 %v3844_v52, %v4055_v18 }
0x1764   :  { %v2625_v42 = vadd.f32 %v2624_v53, %v4082_v34  ;;  %v2776_v53 = vld [vmem:[#allocation5 + $0xe8] sm:$0xff] }
0x1766   :  { %2628 = vrot.lane.b32.xlu0 %v2625_v42, %s3931_s0  ;;  %v2626_v57 = vmul.f32 %v2625_v42, %v2372_v33  ;;  %v3716_v33 = vpack.c.bf16 %v2766_v31, %v2764_v25  ;;  %v2888_v25 = vld [vmem:[#allocation2 + $0x140] sm:$0xff] }
0x1767   :  { %v3744_v35 = vpack.c.bf16 %v2888_v25, %v2887_v11 }
0x1768   :  { %3717 = vmatprep.subr.bf16.mxu0 %v3716_v33  ;;  %v3742_v33 = vpack.c.bf16 %v2870_v20, %v2869_v16  ;;  %v3103_v20 = vld [vmem:[#allocation2 + $0x24] ss:$0 sm:$0xff] }
0x1769   :  { %3719 = vmatpush1.bf16.msra.mxu0 %v3718_v8  ;;  %v2889_v8 = vld [vmem:[#allocation2 + $0x148] sm:$0xff] }
0x176a   :  { %3721 = vmatprep.subr.bf16.mxu0 %v3720_v37  ;;  %v2890_v37 = vld [vmem:[#allocation2 + $0x150] sm:$0xff] }
0x176b   :  { %v3748_v40 = vpack.c.bf16 %v2890_v37, %v2889_v8 }
0x176d   :  { %3723 = vmatpush1.bf16.msra.mxu0 %v3722_v38  ;;  %v2891_v38 = vld [vmem:[#allocation2 + $0x158] sm:$0xff] }
0x176e   :  { %3725 = vmatprep.subr.bf16.mxu0 %v3724_v44  ;;  %v2892_v44 = vld [vmem:[#allocation2 + $0x160] sm:$0xff] }
0x176f   :  { %v3752_v28 = vpack.c.bf16 %v2892_v44, %v2891_v38 }
0x1771   :  { %3727 = vmatpush1.bf16.msra.mxu0 %v3726_v50  ;;  %v2875_v50 = vld [vmem:[#allocation2 + $0xd8] sm:$0xff] }
0x17d8   :  { %v2629_v56 = vpop.permute.xlu0 %2628 }
0x17d9   :  { %v2631_v43 = vmul.f32 %v2629_v56, %v2625_v42 }
0x17db   :  { %2633 = vrot.lane.b32.xlu1 %v2631_v43, %s3932_s2 }
0x184d   :  { %v2634_v58 = vpop.permute.xlu1 %2633 }
0x184e   :  { %v2636_v12 = vadd.f32 %v2634_v58, %v2626_v57  ;;  %v2775_v57 = vld [vmem:[#allocation5 + $0xe0] sm:$0xff]  ;;  %v2777_v58 = vld [vmem:[#allocation5 + $0xf0] sm:$0xff] }
0x1850   :  { %3845 = vtanh.f32 %v2636_v12  ;;  %v3730_v12 = vpack.c.bf16 %v2777_v58, %v2775_v57 }
0x185a   :  { %v3846_v19 = vpop.eup %3845 }
0x185b   :  { %2639 = vrot.lane.b32.xlu0 %v3846_v19, %s3931_s0 }
0x18cd   :  { %v2640_v62 = vpop.permute.xlu0 %2639 }
0x18ce   :  { %v2642_v27 = vmul.f32 %v2640_v62, %v2625_v42  ;;  %v2778_v42 = vld [vmem:[#allocation5 + $0xf8] sm:$0xff] }
0x18cf   :  { %v3728_v43 = vpack.c.bf16 %v2778_v42, %v2776_v53  ;;  %v2894_v53 = vld [vmem:[#allocation2 + $0x170] sm:$0xff] }
0x18d0   :  { %v2644_v59 = vcombine.high %v2642_v27, %v2642_v27  ;;  %v2651_v18 = vrot.slane %v2642_v27, %v4014_v29 }
0x18d1   :  { %3729 = vmatprep.subr.bf16.mxu0 %v3728_v43 }
0x18d2   :  { %2661 = vrot.lane.b32.xlu1 %v2651_v18, %s3932_s2  ;;  %v2659_v34 = vcombine.high %v2651_v18, %v2651_v18  ;;  %v2658_v60 = vrot.slane %v2644_v59, %v4014_v29  ;;  %3731 = vmatpush1.bf16.msra.mxu0 %v3730_v12 }
0x18d4   :  { %2663 = vrot.lane.b32.xlu0 %v2659_v34, %s3932_s2  ;;  %v2660_v61 = vcombine.high %v2658_v60, %v2658_v60 }
0x18d6   :  { %2665 = vrot.lane.b32.xlu1 %v2658_v60, %s3932_s2 }
0x18d8   :  { %2667 = vrot.lane.b32.xlu0 %v2660_v61, %s3932_s2  ;;  %v2881_v61 = vld [vmem:[#allocation2 + $0x108] sm:$0xff] }
0x18d9   :  { %v3732_v15 = vpack.c.bf16 %v2882_v63, %v2881_v61  ;;  %v2879_v63 = vld [vmem:[#allocation2 + $0xf8] sm:$0xff] }
0x18db   :  { %3733 = vmatprep.subr.bf16.mxu1 %v3732_v15  ;;  %v3762_v15 = vpack.c.bf16 %v2880_v10, %v2879_v63 }
0x18dc   :  { %3735 = vmatpush3.bf16.msra.mxu1 %v3734_v51 }
0x18dd   :  { %3737 = vmatprep.subr.bf16.mxu1 %v3736_v26 }
0x18e0   :  { %3739 = vmatpush3.bf16.msra.mxu1 %v3738_v17 }
0x18e1   :  { %3741 = vmatprep.subr.bf16.mxu1 %v3740_v21 }
0x18e4   :  { %3743 = vmatpush3.bf16.msra.mxu1 %v3742_v33 }
0x18e5   :  { %3745 = vmatprep.subr.bf16.mxu1 %v3744_v35 }
0x18e8   :  { %3747 = vmatpush3.bf16.msra.mxu1 %v3746_v39 }
0x18e9   :  { %3749 = vmatprep.subr.bf16.mxu1 %v3748_v40  ;;  %v3104_v40 = vld [vmem:[#allocation2 + $0x23] ss:$0 sm:$0xff] }
0x18ec   :  { %3751 = vmatpush3.bf16.msra.mxu1 %v3750_v49 }
0x18ed   :  { %3753 = vmatprep.subr.bf16.mxu1 %v3752_v28 }
0x1944   :  { %v2662_v46 = vpop.permute.xlu1 %2661 }
0x1946   :  { %v2664_v52 = vpop.permute.xlu0 %2663 }
0x1947   :  { %v2673_v56 = vcombine.low %v2662_v46, %v2664_v52  ;;  %v2876_v46 = vld [vmem:[#allocation2 + $0xe0] sm:$0xff]  ;;  %v2893_v52 = vld [vmem:[#allocation2 + $0x168] sm:$0xff] }
0x1948   :  { %v2666_v62 = vpop.permute.xlu1 %2665  ;;  %v3754_v42 = vpack.c.bf16 %v2876_v46, %v2875_v50 }
0x1949   :  { %v2680_v19 = vrot.slane %v2673_v56, %v4019_v41  ;;  %v3756_v56 = vpack.c.bf16 %v2894_v53, %v2893_v52 }
0x194a   :  { %v2668_v27 = vpop.permute.xlu0 %2667  ;;  %3755 = vmatpush3.bf16.msra.mxu1 %v3754_v42 }
0x194b   :  { %v2681_v59 = vcombine.high %v2680_v19, %v3927_v14  ;;  %v2682_v18 = vcombine.low %v2666_v62, %v2668_v27  ;;  %3757 = vmatprep.subr.bf16.mxu1 %v3756_v56  ;;  %v2877_v27 = vld [vmem:[#allocation2 + $0xe8] sm:$0xff] }
0x194d   :  { %v2691_v34 = vcombine.low %v2680_v19, %v2681_v59  ;;  %v2689_v60 = vrot.slane %v2682_v18, %v4019_v41  ;;  %v2878_v59 = vld [vmem:[#allocation2 + $0xf0] sm:$0xff] }
0x194e   :  { %v3758_v18 = vpack.c.bf16 %v2878_v59, %v2877_v27 }
0x194f   :  { %v2698_v2 = vrot.slane %v2691_v34, %v4019_v41  ;;  %v2690_v3 = vcombine.high %v2689_v60, %v3927_v14  ;;  %v2895_v34 = vld [vmem:[#allocation2 + $0x178] sm:$0xff] }
0x1950   :  { %3759 = vmatpush3.bf16.msra.mxu1 %v3758_v18 }
0x1951   :  { %v2700_v6 = vcombine.low %v2689_v60, %v2690_v3  ;;  %v2699_v9 = vcombine.high %v2698_v2, %v3927_v14  ;;  %v2896_v60 = vld [vmem:[#allocation2 + $0x180] sm:$0xff]  ;;  %v2789_v3 = vrot.slane %v2780_v0, %v2788_v1 }
0x1952   :  { %v3760_v61 = vpack.c.bf16 %v2896_v60, %v2895_v34 }
0x1953   :  { %v2716_v30 = vrot.slane %v2699_v9, %v4014_v29  ;;  %v2707_v7 = vrot.slane %v2700_v6, %v4019_v41  ;;  %v3102_v9 = vld [vmem:[#allocation2 + $0x22] ss:$0 sm:$0xff] }
0x1954   :  { %3761 = vmatprep.subr.bf16.mxu1 %v3760_v61 }
0x1955   :  { %2717 = vrot.lane.b32.xlu1 %v2716_v30, %s3932_s2  ;;  %v2727_v31 = vrot.slane %v2707_v7, %v4014_v29  ;;  %v2708_v32 = vcombine.high %v2707_v7, %v3927_v14  ;;  %3763 = vmatpush3.bf16.msra.mxu1 %v3762_v15 }
0x1957   :  { %2728 = vrot.lane.b32.xlu0 %v2727_v31, %s3931_s0  ;;  %v2738_v23 = vrot.slane %v2708_v32, %v4014_v29 }
0x1959   :  { %2739 = vrot.lane.b32.xlu1 %v2738_v23, %s3933_s16 }
0x19c7   :  { %v2718_v43 = vpop.permute.xlu1 %2717 }
0x19c8   :  { %v2742_v57 = vsel %vm528_vm6, %v2698_v2, %v2718_v43  ;;  %v2785_v2 = vrot.slane %v2780_v0, %v2784_v47 }
0x19c9   :  { %v2729_v58 = vpop.permute.xlu0 %2728 }
0x19ca   :  { %v2744_v12 = vsel %vm2743_vm7, %v2742_v57, %v2729_v58 }
0x19cb   :  { %v2740_v19 = vpop.permute.xlu1 %2739 }
0x19cc   :  { %v2746_v62 = vsel %vm2745_vm8, %v2744_v12, %v2740_v19 }
0x19cd   :  { %2857 = vmatmul.mubr.f32.vlgmr.msra.gmra.mrb[28].mxu0 %v2746_v62 }
0x1aa0   :  { %v2858_v51 = vpop.f32.mrb[28].mxu0 }
0x1aa1   :  { %v2859_v26 = vadd.f32 %v2858_v51, %v2785_v2  ;;  %v2860_v4 = vpop.f32.mrb[29].mxu0 }
0x1aa2   :  { %v2861_v13 = vadd.f32 %v2860_v4, %v2789_v3 }
0x1aa3   :  { %v2863_v55 = vmax.f32 %v2859_v26, 0.0 }
0x1aa4   :  { %v2864_v54 = vmax.f32 %v2861_v13, 0.0 }
0x1aa6   :  { %2966 = vmatprep.mubr.f32.mxu1 %v2864_v54 }
0x1aa7   :  { %2967 = vmatmul.mubr.f32.vlgmr.msra.gmra.mrb[28].mxu1 %v2863_v55 }
0x1b7a   :  { %v3269_v6 = vpop.f32.mrb[28].mxu1 }
0x1b7b   :  { %v3270_v17 = vpop.f32.mrb[29].mxu1 }
0x1b7c   :  { %v3271_v21 = vadd.f32 %v3270_v17, %v3269_v6 }
0x1b7e   :  { %v2969_v16 = vadd.f32 %v3271_v21, %v3102_v9 }
0x1b80   :  { %v2972_v30 = vmax.f32 %v2969_v16, 0.0 }
0x1b82   :  { %v2979_v7 = vmul.f32 %v3103_v20, %v2972_v30 }
0x1b84   :  { %2984 = vrot.lane.b32.xlu1 %v2979_v7, %s3931_s0  ;;  %2981 = vrot.lane.b32.xlu0 %v2979_v7, %s3933_s16 }
0x1b88   :  { %2987 = vrot.lane.b32.xlu0 %v2979_v7, %s3932_s2 }
0x1bf6   :  { %v2985_v11 = vpop.permute.xlu1 %2984  ;;  %v2982_v25 = vpop.permute.xlu0 %2981 }
0x1bf7   :  { %v2990_v31 = vcombine.low %v2979_v7, %v2985_v11 }
0x1bf9   :  { %v2997_v35 = vrot.slane %v2990_v31, %v4014_v29 }
0x1bfa   :  { %v2988_v32 = vpop.permute.xlu0 %2987 }
0x1bfb   :  { %v2998_v33 = vcombine.low %v2982_v25, %v2988_v32 }
0x1bfd   :  { %v3005_v24 = vrot.slane %v2998_v33, %v4014_v29 }
0x1bff   :  { %v3006_v5 = vcombine.low %v2997_v35, %v3005_v24 }
0x1c01   :  { %v3013_v23 = vrot.slane %v3006_v5, %v4019_v41  ;;  %v3043_v41 = vsub.s32 %v4016_v36, %v4011_v22 }
0x1c03   :  { %v3016_v8 = vsel %vm3015_vm9, %v3013_v23, 0.0  ;;  %v3014_v37 = vcombine.high %v3013_v23, %v3927_v14 }
0x1c04   :  { %3017 = vadd.xlane.f32.xlu1 %v3016_v8 }
0x1c05   :  { %v3019_v39 = vsel %vm3015_vm9, %v3014_v37, 0.0 }
0x1c06   :  { %3020 = vadd.xlane.f32.xlu0 %v3019_v39 }
0x1c1c   :  { %3028 = vbcast.lane.b32.xlu0 %v3104_v40, 256 }
0x1c91   :  { %v3018_v38 = vpop.xlane.xlu1 %3017 }
0x1c93   :  { %v3021_v48 = vpop.xlane.xlu0 %3020 }
0x1c97   :  { %v3029_v44 = vpop.permute.xlu0 %3028 }
0x1c98   :  { %v3031_v49 = vadd.f32 %v3029_v44, %v3018_v38  ;;  %v3032_v29 = vadd.f32 %v3029_v44, %v3021_v48 }
0x1c9a   :  { %3036 = vperm.xlu1 %3781, %v3031_v49  }
0x1c9e   :  { %3039 = vperm.xlu1 %3781, %v3032_v29  }
0x1d19   :  { %v3037_v28 = vpop.permute.xlu1 %3036 }
0x1d1a   :  { %v3044_v50 = vrot.slane %v3037_v28, %v3043_v41 }
0x1d1d   :  { %v3040_v14 = vpop.permute.xlu1 %3039 }
0x1d1e   :  { %v3048_v46 = vrot.slane %v3040_v14, %v3043_v41 }
0x1d20   :  { %v3050_v52 = vsel %vm3049_vm10, %v3048_v46, %v3044_v50 }
0x1d21   :  { %3053 = vst.msk [vmem:[#allocation7] sm:$0x3] %vm3052_vm11, %v3050_v52 }
0x1d22   :  { %3902 = shalt.err (!%p3899_p6)
}
0x1d23   :  { %s3903_s22 = scalar_lea.hbm %s4460_s3, 32 }
0x1d24   :  { %p3904_p7 = scmp.ne.s32.totalorder %s4460_s3, %s3903_s22  ;;  %p3907_p8 = scmp.lt.u32.totalorder %s3903_s22, %s4460_s3 }
0x1d26   :  { %p3909_p9 = pnand %p3907_p8, %p3904_p7 }
0x1d28   :  { %3912 = shalt.err (!%p3909_p9)
}
0x1d29   :  { %3063 = dma.vmem_to_hbm [thread:$0]  %s3061_s18, 32, %s4460_s3, [#allocation4]  }
0x1d2a   :  { %3917 = dma.done.wait [#allocation4], 32  }
0x1d2b   :  { %3918 = vsyncadd [#allocation4], 4294967264 }
0x1d2c   :  { %3067 = vsyncpa [#allocation3], 1 }
0x1d2d   :  { %3068 = vsyncpa [#allocation6], 1 }
0x1d2e   :  { %3069 = vsyncpa [#allocation4], 1 }

</bundles_post_ra>
